<compile_context>
chip_gen: v7x
topology: tpu7x:2x2x1
jax: 0.10.0
libtpu: 0.0.40
codegen_flags: <defaults>
</compile_context>

<pallas_src>
import functools
import math

import jax
import jax.numpy as jnp
from jax import lax
from jax.experimental import pallas as pl
from jax.experimental.pallas import tpu as pltpu


def _sdpa_compute(q, k, v, mask, ctx_ref, attn_ref, inv_sqrt_dim):
    # q: (C, TQ), k: (C, HW), v: (C, HW), mask: (TQ, HW) int8 or None
    # Fold the scale into the small q tile (C*TQ elems, not TQ*HW).
    q_scaled = q * inv_sqrt_dim

    # score[tq, hw] = sum_c q[c, tq] * k[c, hw]   (transpose fused into dot_general)
    score = lax.dot_general(
        q_scaled, k,
        dimension_numbers=(((0,), (0,)), ((), ())),
        preferred_element_type=jnp.float32,
    )  # (TQ, HW)

    if mask is not None:
        # torch: score.masked_fill_(mask, -inf)
        score = jnp.where(mask != 0, -jnp.inf, score)

    # Numerically stable softmax over the last axis.
    # NOTE: fully-masked rows produce NaN, matching PyTorch masked_fill+softmax.
    m = jnp.max(score, axis=-1, keepdims=True)
    e = jnp.exp(score - m)
    denom = jnp.sum(e, axis=-1, keepdims=True)
    attn = e * pl.reciprocal(denom, approx=False)   # EUP reciprocal + VALU mul
    attn_ref[0] = attn.astype(attn_ref.dtype)

    # context^T[c, tq] = sum_hw v[c, hw] * attn[tq, hw]  -> lane-dense (C, TQ) store
    ctx_t = lax.dot_general(
        v, attn,
        dimension_numbers=(((1,), (1,)), ((), ())),
        preferred_element_type=jnp.float32,
    )  # (C, TQ)
    ctx_ref[0] = ctx_t.astype(ctx_ref.dtype)


def _sdpa_kernel_nomask(q_ref, k_ref, v_ref, ctx_ref, attn_ref, *, inv_sqrt_dim):
    _sdpa_compute(q_ref[0], k_ref[0], v_ref[0], None, ctx_ref, attn_ref, inv_sqrt_dim)


def _sdpa_kernel_masked(q_ref, k_ref, v_ref, mask_ref, ctx_ref, attn_ref, *, inv_sqrt_dim):
    _sdpa_compute(q_ref[0], k_ref[0], v_ref[0], mask_ref[0], ctx_ref, attn_ref, inv_sqrt_dim)


def _choose_query_tile(hw):
    # TPU (8,128) rule: the last block dim must be a multiple of 128 or the
    # full array extent.  Cap the tile so the working set stays comfortably
    # inside v7x's 64 MiB VMEM while still amortizing per-grid-step overhead.
    if hw % 128 != 0:
        return hw
    for cand in (512, 256, 128):
        if hw % cand == 0:
            return cand
    return hw


def scaled_dot_product_attention(query, key, value, dim, mask=None):
    """JAX/Pallas equivalent of ScaledDotProductAttention.forward.

    query/key/value: (B, C, H, W) float32.
    Returns (context (B, C, H, W), attn (B, HW, HW)).
    """
    B, C, H, W = query.shape
    HW = H * W
    TQ = _choose_query_tile(HW)
    n_q = HW // TQ

    q = query.reshape(B, C, HW).astype(jnp.float32)
    k = key.reshape(B, C, HW).astype(jnp.float32)
    v = value.reshape(B, C, HW).astype(jnp.float32)

    inv_sqrt_dim = 1.0 / math.sqrt(float(dim))

    q_spec = pl.BlockSpec((1, C, TQ), lambda b, qi: (b, 0, qi))
    kv_spec = pl.BlockSpec((1, C, HW), lambda b, qi: (b, 0, 0))
    ctx_spec = pl.BlockSpec((1, C, TQ), lambda b, qi: (b, 0, qi))     # lane-dense output
    attn_spec = pl.BlockSpec((1, TQ, HW), lambda b, qi: (b, qi, 0))

    out_shape = (
        jax.ShapeDtypeStruct((B, C, HW), jnp.float32),   # context^T (C-major)
        jax.ShapeDtypeStruct((B, HW, HW), jnp.float32),  # attention weights
    )
    compiler_params = pltpu.CompilerParams(
        dimension_semantics=("parallel", "parallel"),
        vmem_limit_bytes=48 * 1024 * 1024,   # fits v7x's 64 MiB with headroom
    )

    if mask is None:
        # No dummy mask: kernel variant with no mask input at all.
        kernel = functools.partial(_sdpa_kernel_nomask, inv_sqrt_dim=inv_sqrt_dim)
        ctx_t, attn = pl.pallas_call(
            kernel,
            out_shape=out_shape,
            grid_spec=pltpu.PrefetchScalarGridSpec(
                num_scalar_prefetch=0,
                grid=(B, n_q),
                in_specs=[q_spec, kv_spec, kv_spec],
                out_specs=[ctx_spec, attn_spec],
            ),
            compiler_params=compiler_params,
        )(q, k, v)
    else:
        # int8 mask: 4x less HBM traffic than int32.
        mask_i8 = jnp.reshape(mask, (B, HW, HW)).astype(jnp.int8)
        mask_spec = pl.BlockSpec((1, TQ, HW), lambda b, qi: (b, qi, 0))
        kernel = functools.partial(_sdpa_kernel_masked, inv_sqrt_dim=inv_sqrt_dim)
        ctx_t, attn = pl.pallas_call(
            kernel,
            out_shape=out_shape,
            grid_spec=pltpu.PrefetchScalarGridSpec(
                num_scalar_prefetch=0,
                grid=(B, n_q),
                in_specs=[q_spec, kv_spec, kv_spec, mask_spec],
                out_specs=[ctx_spec, attn_spec],
            ),
            compiler_params=compiler_params,
        )(q, k, v, mask_i8)

    # torch computes context as bmm(attn, v^T) -> contiguous (B, HW, C), then
    # .view(B, C, H, W) (raw reshape).  Reproduce exactly: transpose the
    # C-major kernel output back to (B, HW, C), then raw-reshape.
    context = jnp.transpose(ctx_t, (0, 2, 1)).reshape(B, C, H, W)
    return context, attn


if __name__ == "__main__":
    B, C, H, W = 2, 4, 16, 16
    dim = C  # ScaledDotProductAttention(dim)
    HW = H * W

    key0 = jax.random.PRNGKey(0)
    kq, kk, kv, km = jax.random.split(key0, 4)
    query = jax.random.normal(kq, (B, C, H, W), dtype=jnp.float32)
    key_t = jax.random.normal(kk, (B, C, H, W), dtype=jnp.float32)
    value = jax.random.normal(kv, (B, C, H, W), dtype=jnp.float32)

    # ---- no-mask path ----
    context, attn = scaled_dot_product_attention(query, key_t, value, dim, mask=None)
    jax.block_until_ready(context)
    jax.block_until_ready(attn)

    qf = query.reshape(B, C, HW)
    kf = key_t.reshape(B, C, HW)
    vf = value.reshape(B, C, HW)
    score_ref = jnp.einsum("bcq,bck->bqk", qf, kf) / math.sqrt(float(dim))
    attn_ref = jax.nn.softmax(score_ref, axis=-1)
    ctx_ref = jnp.einsum("bqk,bck->bqc", attn_ref, vf).reshape(B, C, H, W)
    assert jnp.allclose(attn, attn_ref, atol=1e-5, rtol=1e-5)
    assert jnp.allclose(context, ctx_ref, atol=1e-5, rtol=1e-5)

    # ---- masked path ----
    mask = jax.random.bernoulli(km, p=0.25, shape=(B, HW, HW))
    context_m, attn_m = scaled_dot_product_attention(query, key_t, value, dim, mask=mask)
    jax.block_until_ready(context_m)
    jax.block_until_ready(attn_m)

    score_m = jnp.where(mask, -jnp.inf, score_ref)
    attn_m_ref = jax.nn.softmax(score_m, axis=-1)
    ctx_m_ref = jnp.einsum("bqk,bck->bqc", attn_m_ref, vf).reshape(B, C, H, W)
    assert jnp.allclose(attn_m, attn_m_ref, atol=1e-5, rtol=1e-5)
    assert jnp.allclose(context_m, ctx_m_ref, atol=1e-5, rtol=1e-5)

    print("KERNEL_OK")
</pallas_src>

<mosaic_0001>
module attributes {stable_mosaic.version = 11 : i64} {
  func.func @_sdpa_kernel_nomask(%arg0: i32, %arg1: i32, %arg2: memref<1x4x256xf32, #tpu.memory_space<vmem>>, %arg3: memref<1x4x256xf32, #tpu.memory_space<vmem>>, %arg4: memref<1x4x256xf32, #tpu.memory_space<vmem>>, %arg5: memref<1x4x256xf32, #tpu.memory_space<vmem>>, %arg6: memref<1x256x256xf32, #tpu.memory_space<vmem>>) attributes {dimension_semantics = [#tpu.dimension_semantics<parallel>, #tpu.dimension_semantics<parallel>], iteration_bounds = array<i64: 2, 1>, scalar_prefetch = 0 : i64, scratch_operands = 0 : i64, tpu.core_type = #tpu.core_type<tc>, window_params = [{transform_indices = @transform_0, window_bounds = array<i64: 1, 4, 256>}, {transform_indices = @transform_1, window_bounds = array<i64: 1, 4, 256>}, {transform_indices = @transform_2, window_bounds = array<i64: 1, 4, 256>}, {transform_indices = @transform_3, window_bounds = array<i64: 1, 4, 256>}, {transform_indices = @transform_4, window_bounds = array<i64: 1, 256, 256>}]} {
    %c0 = arith.constant 0 : index
    %c0_0 = arith.constant 0 : index
    %c0_1 = arith.constant 0 : index
    %0 = vector.load %arg2[%c0, %c0_0, %c0_1] : memref<1x4x256xf32, #tpu.memory_space<vmem>>, vector<1x4x256xf32>
    %1 = vector.shape_cast %0 : vector<1x4x256xf32> to vector<4x256xf32>
    %c0_2 = arith.constant 0 : index
    %c0_3 = arith.constant 0 : index
    %c0_4 = arith.constant 0 : index
    %2 = vector.load %arg3[%c0_2, %c0_3, %c0_4] : memref<1x4x256xf32, #tpu.memory_space<vmem>>, vector<1x4x256xf32>
    %3 = vector.shape_cast %2 : vector<1x4x256xf32> to vector<4x256xf32>
    %c0_5 = arith.constant 0 : index
    %c0_6 = arith.constant 0 : index
    %c0_7 = arith.constant 0 : index
    %4 = vector.load %arg4[%c0_5, %c0_6, %c0_7] : memref<1x4x256xf32, #tpu.memory_space<vmem>>, vector<1x4x256xf32>
    %5 = vector.shape_cast %4 : vector<1x4x256xf32> to vector<4x256xf32>
    %cst = arith.constant 5.000000e-01 : f32
    %6 = vector.broadcast %cst : f32 to vector<4x256xf32>
    %7 = arith.mulf %1, %6 : vector<4x256xf32>
    %cst_8 = arith.constant dense<0.000000e+00> : vector<256x256xf32>
    %8 = tpu.matmul %7, %3, %cst_8 {dimension_numbers = #tpu.dot_dimension_numbers<[0], [0], [1], [1], [0, 1, 1, 1], [], []>} : vector<4x256xf32>, vector<4x256xf32>, vector<256x256xf32> -> vector<256x256xf32>
    %cst_9 = arith.constant dense<0xFF800000> : vector<256xf32>
    %9 = vector.multi_reduction <maximumf>, %8, %cst_9 [1] : vector<256x256xf32> to vector<256xf32>
    %10 = vector.shape_cast %9 : vector<256xf32> to vector<256x1xf32>
    %11 = vector.broadcast %10 : vector<256x1xf32> to vector<256x256xf32>
    %12 = arith.subf %8, %11 : vector<256x256xf32>
    %13 = math.exp %12 : vector<256x256xf32>
    %cst_10 = arith.constant dense<0.000000e+00> : vector<256xf32>
    %14 = vector.multi_reduction <add>, %13, %cst_10 [1] : vector<256x256xf32> to vector<256xf32>
    %15 = vector.shape_cast %14 : vector<256xf32> to vector<256x1xf32>
    %16 = tpu.reciprocal %15 : vector<256x1xf32> -> vector<256x1xf32>
    %17 = vector.broadcast %16 : vector<256x1xf32> to vector<256x256xf32>
    %18 = arith.mulf %13, %17 : vector<256x256xf32>
    %c0_11 = arith.constant 0 : index
    %c0_12 = arith.constant 0 : index
    %c0_13 = arith.constant 0 : index
    %19 = vector.load %arg6[%c0_11, %c0_12, %c0_13] : memref<1x256x256xf32, #tpu.memory_space<vmem>>, vector<1x256x256xf32>
    %20 = vector.shape_cast %19 : vector<1x256x256xf32> to vector<256x256xf32>
    %21 = vector.shape_cast %18 : vector<256x256xf32> to vector<1x256x256xf32>
    tpu.vector_store %arg6[%c0_11, %c0_12, %c0_13], %21 {strides = array<i32>} : memref<1x256x256xf32, #tpu.memory_space<vmem>>, vector<1x256x256xf32>,
    %cst_14 = arith.constant dense<0.000000e+00> : vector<4x256xf32>
    %22 = tpu.matmul %5, %18, %cst_14 {dimension_numbers = #tpu.dot_dimension_numbers<[1], [1], [0], [0], [0, 0, 1, 0], [], []>} : vector<4x256xf32>, vector<256x256xf32>, vector<4x256xf32> -> vector<4x256xf32>
    %c0_15 = arith.constant 0 : index
    %c0_16 = arith.constant 0 : index
    %c0_17 = arith.constant 0 : index
    %23 = vector.load %arg5[%c0_15, %c0_16, %c0_17] : memref<1x4x256xf32, #tpu.memory_space<vmem>>, vector<1x4x256xf32>
    %24 = vector.shape_cast %23 : vector<1x4x256xf32> to vector<4x256xf32>
    %25 = vector.shape_cast %22 : vector<4x256xf32> to vector<1x4x256xf32>
    tpu.vector_store %arg5[%c0_15, %c0_16, %c0_17], %25 {strides = array<i32>} : memref<1x4x256xf32, #tpu.memory_space<vmem>>, vector<1x4x256xf32>,
    return
  }
  func.func @transform_0(%arg0: i32, %arg1: i32) -> (i32, i32, i32) {
    %c0_i32 = arith.constant 0 : i32
    %c0_i32_0 = arith.constant 0 : i32
    return %arg0, %c0_i32, %arg1 : i32, i32, i32
  }
  func.func @transform_1(%arg0: i32, %arg1: i32) -> (i32, i32, i32) {
    %c0_i32 = arith.constant 0 : i32
    %c0_i32_0 = arith.constant 0 : i32
    %c0_i32_1 = arith.constant 0 : i32
    return %arg0, %c0_i32, %c0_i32_0 : i32, i32, i32
  }
  func.func @transform_2(%arg0: i32, %arg1: i32) -> (i32, i32, i32) {
    %c0_i32 = arith.constant 0 : i32
    %c0_i32_0 = arith.constant 0 : i32
    %c0_i32_1 = arith.constant 0 : i32
    return %arg0, %c0_i32, %c0_i32_0 : i32, i32, i32
  }
  func.func @transform_3(%arg0: i32, %arg1: i32) -> (i32, i32, i32) {
    %c0_i32 = arith.constant 0 : i32
    %c0_i32_0 = arith.constant 0 : i32
    return %arg0, %c0_i32, %arg1 : i32, i32, i32
  }
  func.func @transform_4(%arg0: i32, %arg1: i32) -> (i32, i32, i32) {
    %c0_i32 = arith.constant 0 : i32
    %c0_i32_0 = arith.constant 0 : i32
    return %arg0, %arg1, %c0_i32 : i32, i32, i32
  }
}

</mosaic_0001>

<bundles_post_ra>
// kernel: tpu_custom_call.1
= control target key start
LH: loop header
LB: loop body
LE: loop exit
PB: predicated region body
PF: predicated region fallthrough
CT: control target
= control target key end

     0   :  { %s3171_s0 = inlined_call_operand.hbm [shape: f32[2,4,256], index: 0, kind: input, shape index: {}]   ;;  %s3172_s1 = inlined_call_operand.hbm [shape: f32[2,4,256], index: 1, kind: input, shape index: {}]   ;;  %s3173_s2 = inlined_call_operand.hbm [shape: f32[2,4,256], index: 2, kind: input, shape index: {}]   ;;  %s3174_s3 = inlined_call_operand.hbm [shape: f32[2,4,256], index: 3, kind: output, shape index: {0}]   ;;  %s3175_s4 = inlined_call_operand.hbm [shape: f32[2,256,256], index: 4, kind: output, shape index: {1}]  }
   0x1   :  { %3209 = sst [smem:[#allocation32_spill]] %s3172_s1 }
   0x2   :  { %10 = vsyncpa [#allocation3], 0 }
   0x3   :  { %12 = vsyncpa [#allocation3 + $0x1], 0 }
   0x4   :  { %13 = vsyncpa [#allocation6], 0 }
   0x5   :  { %15 = vsyncpa [#allocation6 + $0x1], 0 }
   0x6   :  { %16 = vsyncpa [#allocation4], 0 }
   0x7   :  { %18 = vsyncpa [#allocation4 + $0x1], 0 }
   0x8   :  { %19 = vsyncpa [#allocation10], 0 }
   0x9   :  { %21 = vsyncpa [#allocation10 + $0x1], 0  ;;  %s2226_s15 = smov 0   ;;  %s2228_s16 = smov 0  }
   0xa   :  { %s2230_s17 = smov 0   ;;  %s2232_s18 = smov 0  }
   0xb   :  { %s2234_s19 = smov 0   ;;  %s2236_s20 = smov 0  }
   0xc LB: > { %3210 = sst [smem:[#allocation15_spill]] %s2187_s19  ;;  %s2257_s21 = sadd.s32 4294967295, %s2191_s20   ;;  %s2191_s20 = sphi %s2236_s20, %s27_s20   ;;  %s2187_s19 = sphi %s2234_s19, %s3284_s19   ;;  %s2183_s18 = sphi %s2232_s18, %s3283_s18   ;;  %s2179_s17 = sphi %s2230_s17, %s3287_s17   ;;  %s2175_s16 = sphi %s2228_s16, %s3286_s16   ;;  %s2171_s15 = sphi %s2226_s15, %s3285_s15  }
   0xd   : > { %3211 = sst [smem:[#allocation16_spill]] %s2191_s20  ;;  %s1580_s22 = sadd.s32 4294967294, %s2191_s20  }
   0xe   : > { %s39_s23 = sadd.s32 1, %s2187_s19  ;;  %s48_s24 = sadd.s32 1, %s2179_s17 }
   0xf   : > { %p41_p0 = scmp.ge.s32.totalorder %s39_s23, 2  ;;  %p55_p1 = scmp.ne.s32.totalorder %s2179_s17, %s2175_s16 }
  0x10   : > { %p56_p2 = scmp.eq.s32.totalorder %s2191_s20, 0  ;;  %p61_p3 = scmp.ne.s32.totalorder %s2175_s16, %s2171_s15 }
  0x11   : > { %s3289_s23 = smov (%p41_p0, %s39_s23), 0  ;;  %p62_p5 = scmp.eq.s32.totalorder %s2257_s21, 0 }
  0x12   : > { %3212 = sst [smem:[#allocation17_spill]] %s3289_s23  ;;  %p2269_p4 = por %p56_p2, %p55_p1 }
  0x13   : > { %s43_s26 = ssub.s32 %s2187_s19, %s3289_s23  ;;  %p139_p6 = scmp.eq.s32.totalorder %s2257_s21, 1 }
  0x14   : > { %p46_p7 = scmp.eq.s32.totalorder %s43_s26, 0  ;;  %p2277_p8 = por %p62_p5, %p61_p3 }
  0x15   : > { %p2281_p9 = por %p139_p6, %p55_p1  ;;  %p145_p10 = scmp.eq.s32.totalorder %s1580_s22, 1 }
  0x16   : > { %s3214_s27 = scalar_select %p2277_p8, 1, 0 }
  0x17   : > { %s3215_s28 = scalar_select %p2281_p9, 1, 0 }
  0x18   : > { %s2286_s29 = scalar_select %p46_p7, %s2179_s17, %s48_s24  }
  0x19   : > { %p2288_p11 = por %p145_p10, %p61_p3  ;;  %p1736_p13 = scmp.lt.s32.totalorder %s2191_s20, 2 }
  0x1a   : > { %3216 = sst [smem:[#allocation18_spill]] %s2286_s29  ;;  %s3176_s5 = sand.u32 1, %s2179_s17  }
  0x1b   : > { %s3217_s30 = scalar_select %p2288_p11, 1, 0 }
  0x1c   : > { %s2297_s6 = sshll.u32 %s3176_s5, 3  ;;  %s2300_s7 = sshll.u32 %s2187_s19, 7 }
  0x1d   : > { %p2304_p0 = pnand %p1736_p13, %p2269_p4  ;;  %s214_s9 = sand.u32 1, %s2191_s20  }
  0x1e   : > { %s3219_s1 = sld [smem:[#allocation32_spill]]  ;;  %s218_s13 = scalar_lea.vmem [#allocation5], %s2297_s6 }
  0x1f   : > { %s3218_s8 = scalar_select %p2304_p0, 1, 0 }
  0x20   : > { %s226_s14 = sshll.u32 %s218_s13, 4  ;;  %s2320_s22 = scalar_lea.sflag [#allocation6], %s214_s9  ;;  %s2317_s14 = int_to_ptr.vmem [resolvable:$true] %s226_s14 }
  0x21   : > { %p2326_p4 = pneg %p2304_p0 }
  0x24   : > { %s2313_s12 = scalar_lea.hbm %s3219_s1, %s2300_s7  ;;  %s1988_s11 = scalar_lea.hbm %s3219_s1, 256 }
  0x25   : > { %s1983_s24 = scalar_lea.hbm %s2313_s12, 128  ;;  %p1989_p7 = scmp.lt.u32.totalorder %s2313_s12, %s3219_s1 }
  0x26   : > { %p1984_p3 = scmp.ne.s32.totalorder %s2313_s12, %s1983_s24  ;;  %p1990_p10 = scmp.lt.u32.totalorder %s1988_s11, %s1983_s24 }
  0x27   : > { %p1992_p12 = scmp.lt.u32.totalorder %s1983_s24, %s2313_s12 }
  0x28   : > { %p1986_p5 = pnand %p2326_p4, %p1984_p3  ;;  %p1991_p13 = por %p1990_p10, %p1989_p7 }
  0x2a   : > { %p1987_p6 = pneg %p1986_p5  ;;  %p1993_p1 = por %p1992_p12, %p1991_p13 }
  0x2c   : > { %p1994_p2 = pnand %p1993_p1, %p1987_p6 }
  0x2e   : > { %1997 = shalt.err (!%p1994_p2)
}
  0x2f   : > { %s1998_s9 = scalar_lea.vmem %s2317_s14, 128  ;;  %s2193_s26 = smov [#allocation5]  }
  0x30   : > { %p1999_p3 = scmp.ne.s32.totalorder %s2317_s14, %s1998_s9  ;;  %s2003_s10 = sshll.u32 %s2193_s26, 4  ;;  %s2004_s10 = int_to_ptr.vmem [resolvable:$false] %s2003_s10 }
  0x31   : > { %s2005_s5 = scalar_lea.vmem %s2004_s10, 256  ;;  %p2006_p9 = scmp.lt.s32.totalorder %s2317_s14, %s2004_s10 }
  0x32   : > { %p2001_p5 = pnand %p1999_p3, %p2326_p4  ;;  %p2007_p8 = scmp.lt.s32.totalorder %s2005_s5, %s1998_s9 }
  0x34   : > { %p2002_p11 = pneg %p2001_p5  ;;  %p2008_p7 = por %p2007_p8, %p2006_p9 }
  0x36   : > { %p2009_p10 = pnand %p2008_p7, %p2002_p11 }
  0x38   : > { %2012 = shalt.err (!%p2009_p10)
}
  0x39   : > { %1725 = dma.hbm_to_vmem [thread:$0]  (!%p2304_p0), %s2313_s12, 128, %s2317_s14, %s2320_s22  }
  0x3a   : > { %p3221_p12 = scmp.lt.s32.totalorder %s2191_s20, 3  ;;  %p3222_p1 = scmp.ge.s32.totalorder %s2191_s20, 1 }
  0x3b   : > { %s2362_s9 = scalar_lea.hbm %s3171_s0, %s2300_s7  ;;  %s197_s26 = scalar_lea.vmem [#allocation2], %s2297_s6 }
  0x3c   : > { %p2354_p2 = pnand %p3222_p1, %p3221_p12  ;;  %s207_s10 = sshll.u32 %s197_s26, 4  ;;  %s2365_s10 = int_to_ptr.vmem [resolvable:$true] %s207_s10 }
  0x3d   : > { %s2371_s5 = scalar_lea.hbm %s3173_s2, %s2300_s7  ;;  %s3224_s1 = sand.u32 1, %s2179_s17  }
  0x3e   : > { %s3223_s24 = scalar_select %p2354_p2, 1, 0 }
  0x3f   : > { %s194_s23 = scalar_lea.sflag [#allocation3], %s3224_s1  ;;  %s2013_s19 = scalar_lea.hbm %s2362_s9, 128 }
  0x40   : > { %p2014_p8 = scmp.ne.s32.totalorder %s2362_s9, %s2013_s19  ;;  %s2018_s29 = scalar_lea.hbm %s3171_s0, 256 }
  0x41   : > { %p2019_p6 = scmp.lt.u32.totalorder %s2362_s9, %s3171_s0  ;;  %p2020_p13 = scmp.lt.u32.totalorder %s2018_s29, %s2013_s19 }
  0x42   : > { %p2016_p9 = pnand %p2014_p8, %p2326_p4  ;;  %p2022_p5 = scmp.lt.u32.totalorder %s2013_s19, %s2362_s9 }
  0x43   : > { %p2021_p3 = por %p2020_p13, %p2019_p6 }
  0x44   : > { %p2017_p11 = pneg %p2016_p9 }
  0x45   : > { %p2023_p7 = por %p2022_p5, %p2021_p3 }
  0x47   : > { %p2024_p10 = pnand %p2023_p7, %p2017_p11 }
  0x49   : > { %2027 = shalt.err (!%p2024_p10)
}
  0x4a   : > { %s2028_s1 = scalar_lea.vmem %s2365_s10, 128  ;;  %s2194_s7 = smov [#allocation2]  }
  0x4b   : > { %p2029_p12 = scmp.ne.s32.totalorder %s2365_s10, %s2028_s1  ;;  %s2033_s12 = sshll.u32 %s2194_s7, 4  ;;  %s2034_s12 = int_to_ptr.vmem [resolvable:$false] %s2033_s12 }
  0x4c   : > { %s2035_s20 = scalar_lea.vmem %s2034_s12, 256  ;;  %p2036_p9 = scmp.lt.s32.totalorder %s2365_s10, %s2034_s12 }
  0x4d   : > { %p2031_p1 = pnand %p2029_p12, %p2326_p4  ;;  %p2037_p2 = scmp.lt.s32.totalorder %s2035_s20, %s2028_s1 }
  0x4f   : > { %p2032_p8 = pneg %p2031_p1  ;;  %p2038_p6 = por %p2037_p2, %p2036_p9 }
  0x51   : > { %p2039_p13 = pnand %p2038_p6, %p2032_p8 }
  0x53   : > { %2042 = shalt.err (!%p2039_p13)
}
  0x54   : > { %1722 = dma.hbm_to_vmem [thread:$0]  (!%p2304_p0), %s2362_s9, 128, %s2365_s10, %s194_s23  }
  0x55   : > { %s237_s19 = scalar_lea.vmem [#allocation7], %s2297_s6  ;;  %s2043_s14 = scalar_lea.hbm %s2371_s5, 128 }
  0x56   : > { %s245_s29 = sshll.u32 %s237_s19, 4  ;;  %p2044_p11 = scmp.ne.s32.totalorder %s2371_s5, %s2043_s14  ;;  %s246_s29 = int_to_ptr.vmem [resolvable:$true] %s245_s29 }
  0x57   : > { %s2048_s26 = scalar_lea.hbm %s3173_s2, 256  ;;  %p2049_p5 = scmp.lt.u32.totalorder %s2371_s5, %s3173_s2 }
  0x58   : > { %p2046_p2 = pnand %p2044_p11, %p2326_p4  ;;  %p2050_p7 = scmp.lt.u32.totalorder %s2048_s26, %s2043_s14 }
  0x59   : > { %p2052_p12 = scmp.lt.u32.totalorder %s2043_s14, %s2371_s5 }
  0x5a   : > { %p2047_p3 = pneg %p2046_p2  ;;  %p2051_p10 = por %p2050_p7, %p2049_p5 }
  0x5c   : > { %p2053_p1 = por %p2052_p12, %p2051_p10 }
  0x5e   : > { %p2054_p8 = pnand %p2053_p1, %p2047_p3 }
  0x60   : > { %2057 = shalt.err (!%p2054_p8)
}
  0x61   : > { %s2058_s23 = scalar_lea.vmem %s246_s29, 128  ;;  %s2195_s6 = smov [#allocation7]  }
  0x62   : > { %p2059_p9 = scmp.ne.s32.totalorder %s246_s29, %s2058_s23  ;;  %s2063_s9 = sshll.u32 %s2195_s6, 4  ;;  %s2064_s9 = int_to_ptr.vmem [resolvable:$false] %s2063_s9 }
  0x63   : > { %s2065_s10 = scalar_lea.vmem %s2064_s9, 256  ;;  %p2066_p11 = scmp.lt.s32.totalorder %s246_s29, %s2064_s9 }
  0x64   : > { %p2061_p6 = pnand %p2059_p9, %p2326_p4  ;;  %p2067_p2 = scmp.lt.s32.totalorder %s2065_s10, %s2058_s23 }
  0x66   : > { %p2062_p13 = pneg %p2061_p6  ;;  %p2068_p0 = por %p2067_p2, %p2066_p11 }
  0x68   : > { %p2069_p5 = pnand %p2068_p0, %p2062_p13 }
  0x6a   : > { %2072 = shalt.err (!%p2069_p5)
}
  0x6b   : > { %p3225_p7 = scmp.ne.s32.totalorder %s3218_s8, 0  ;;  %p3226_p3 = scmp.ne.s32.totalorder %s3223_s24, 0 }
  0x6d   : > { %1728 = dma.hbm_to_vmem [thread:$0]  (!%p3225_p7), %s2371_s5, 128, %s246_s29, %s2320_s22  }
  0x6e   : > { %254 = sbr.rel (%p3226_p3) target bundleno = 1149 (0x47d), region = 32 }
  0x75   : > { %s2418_s25 = sand.u32 1, %s2175_s16   ;;  %p3227_p0 = scmp.ne.s32.totalorder %s3214_s27, 0 }
  0x76   : > { %s2421_s12 = sshll.u32 %s2418_s25, 3  ;;  %s257_s20 = scalar_lea.sflag [#allocation3], %s2418_s25 }
  0x77   : > { %s260_s19 = scalar_lea.vmem [#allocation2], %s2421_s12 }
  0x78   : > { %2154 = dma.done.wait (%p3227_p0), %s257_s20, 128  }
  0x79   : > { %2156 = vsyncadd (%p3227_p0), %s257_s20, 4294967168  ;;  %s265_s8 = sand.u32 1, %s2257_s21   ;;  %s269_s24 = scalar_lea.vmem [#allocation5], %s2421_s12 }
  0x7a   : > { %s266_s22 = scalar_lea.sflag [#allocation6], %s265_s8 }
  0x7b   : > { %2158 = dma.done.wait (%p3227_p0), %s266_s22, 256  }
  0x7c   : > { %2160 = vsyncadd (%p3227_p0), %s266_s22, 4294967040  ;;  %v2196_v0 = vmov 0.0   ;;  %v321_v1 = vld [vmem:[%s260_s19] sm:$0xff]  ;;  %v322_v2 = vld [vmem:[%s269_s24] sm:$0xff]  ;;  %vm491_vm0 = vcmask 1043456   ;;  %vm394_vm1 = vcmask 31744  }
  0x7d   : > { %560 = vmatprep.mubr.f32.mxu0 %v2196_v0  ;;  %v324_v3 = vmul.f32 0.5, %v321_v1  ;;  %v393_v4 = vcombine.high %v322_v2, %v322_v2  ;;  %s1597_s21 = sshll.u32 %s2418_s25, 9  ;;  %s278_s5 = scalar_lea.vmem [#allocation7], %s2421_s12 }
  0x7e   : > { %s2950_s27 = scalar_lea.vmem [#allocation9], %s1597_s21  ;;  %s1644_s29 = sshll.u32 %s2183_s18, 13 }
  0x7f   : > { %328 = vxpose.xlu0.b32.start.end [1/1] (short) %v324_v3, 128  ;;  %1598 = vmatprep.subr.msk.mxu0 %vm491_vm0, %v393_v4  ;;  %v326_v5 = vcombine.high %v324_v3, %v324_v3  ;;  %s1414_s14 = sshll.u32 %s2950_s27, 4  ;;  %s3089_s26 = scalar_lea.hbm %s3175_s4, %s1644_s29  ;;  %s3091_s14 = int_to_ptr.vmem [resolvable:$true] %s1414_s14 }
  0x80   : > { %1599 = vmatpush1.msk.msra.mxu0 %vm491_vm0, %v322_v2  ;;  %s1382_s1 = scalar_lea.sflag [#allocation10], %s2418_s25  ;;  %s2073_s7 = scalar_lea.vmem %s3091_s14, 8192 }
  0x81   : > { %p2074_p4 = scmp.ne.s32.totalorder %s3091_s14, %s2073_s7  ;;  %p3278_p10 = scmp.ne.s32.totalorder %s3215_s28, 0 }
  0x82   : > { %s2197_s23 = smov [#allocation9]  }
  0x83   : > { %p2075_p12 = pnand %p2074_p4, %p3278_p10  ;;  %s2077_s6 = sshll.u32 %s2197_s23, 4  ;;  %s2078_s6 = int_to_ptr.vmem [resolvable:$false] %s2077_s6 }
  0x84   : > { %s2079_s9 = scalar_lea.vmem %s2078_s6, 16384  ;;  %p2080_p8 = scmp.lt.s32.totalorder %s3091_s14, %s2078_s6 }
  0x85   : > { %p2076_p1 = pneg %p2075_p12  ;;  %p2081_p9 = scmp.lt.s32.totalorder %s2079_s9, %s2073_s7 }
  0x87   : > { %p2082_p6 = por %p2081_p9, %p2080_p8 }
  0x89   : > { %p2083_p13 = pnand %p2082_p6, %p2076_p1 }
  0xbc   : > { %360 = vxpose.xlu0.b32.start.end [1/1] (short) %v326_v5, 128 }
  0xff   : > { %v344_v6 = vpop.trf.xlu0 }
 0x100   : > { %1600 = vmatmul.mubr.msk.f32.vlgmr.msra.gmra.mrb[0].mxu0 %vm394_vm1, %v344_v6 }
 0x101   : > { %566 = vmatprep.mubr.f32.mxu0 %v2196_v0 }
 0x103   : > { %v345_v7 = vpop.trf.xlu0 }
 0x104   : > { %1601 = vmatmul.mubr.msk.f32.gmra.mrb[2].mxu0 %vm394_vm1, %v345_v7 }
 0x105   : > { %572 = vmatprep.mubr.f32.mxu0 %v2196_v0 }
 0x107   : > { %v346_v8 = vpop.trf.xlu0 }
 0x108   : > { %1602 = vmatmul.mubr.msk.f32.gmra.mrb[4].mxu0 %vm394_vm1, %v346_v8 }
 0x109   : > { %578 = vmatprep.mubr.f32.mxu0 %v2196_v0 }
 0x10b   : > { %v347_v9 = vpop.trf.xlu0 }
 0x10c   : > { %1603 = vmatmul.mubr.msk.f32.gmra.mrb[6].mxu0 %vm394_vm1, %v347_v9 }
 0x10d   : > { %584 = vmatprep.mubr.f32.mxu0 %v2196_v0 }
 0x10f   : > { %v348_v10 = vpop.trf.xlu0 }
 0x110   : > { %1604 = vmatmul.mubr.msk.f32.gmra.mrb[8].mxu0 %vm394_vm1, %v348_v10 }
 0x111   : > { %590 = vmatprep.mubr.f32.mxu0 %v2196_v0 }
 0x113   : > { %v349_v11 = vpop.trf.xlu0 }
 0x114   : > { %1605 = vmatmul.mubr.msk.f32.gmra.mrb[10].mxu0 %vm394_vm1, %v349_v11 }
 0x115   : > { %596 = vmatprep.mubr.f32.mxu0 %v2196_v0 }
 0x117   : > { %v350_v12 = vpop.trf.xlu0 }
 0x118   : > { %1606 = vmatmul.mubr.msk.f32.gmra.mrb[12].mxu0 %vm394_vm1, %v350_v12 }
 0x119   : > { %602 = vmatprep.mubr.f32.mxu0 %v2196_v0 }
 0x11b   : > { %v351_v13 = vpop.trf.xlu0 }
 0x11c   : > { %1607 = vmatmul.mubr.msk.f32.gmra.mrb[14].mxu0 %vm394_vm1, %v351_v13 }
 0x11d   : > { %608 = vmatprep.mubr.f32.mxu0 %v2196_v0 }
 0x11f   : > { %v352_v14 = vpop.trf.xlu0 }
 0x120   : > { %1608 = vmatmul.mubr.msk.f32.gmra.mrb[16].mxu0 %vm394_vm1, %v352_v14 }
 0x121   : > { %614 = vmatprep.mubr.f32.mxu0 %v2196_v0 }
 0x123   : > { %v353_v15 = vpop.trf.xlu0 }
 0x124   : > { %1609 = vmatmul.mubr.msk.f32.gmra.mrb[18].mxu0 %vm394_vm1, %v353_v15 }
 0x125   : > { %620 = vmatprep.mubr.f32.mxu0 %v2196_v0 }
 0x127   : > { %v354_v16 = vpop.trf.xlu0 }
 0x128   : > { %1610 = vmatmul.mubr.msk.f32.gmra.mrb[20].mxu0 %vm394_vm1, %v354_v16 }
 0x129   : > { %626 = vmatprep.mubr.f32.mxu0 %v2196_v0 }
 0x12b   : > { %v355_v17 = vpop.trf.xlu0 }
 0x12c   : > { %1611 = vmatmul.mubr.msk.f32.gmra.mrb[22].mxu0 %vm394_vm1, %v355_v17 }
 0x12d   : > { %632 = vmatprep.mubr.f32.mxu0 %v2196_v0 }
 0x12f   : > { %v356_v18 = vpop.trf.xlu0 }
 0x130   : > { %1612 = vmatmul.mubr.msk.f32.gmra.mrb[24].mxu0 %vm394_vm1, %v356_v18 }
 0x131   : > { %638 = vmatprep.mubr.f32.mxu0 %v2196_v0 }
 0x133   : > { %v357_v19 = vpop.trf.xlu0 }
 0x134   : > { %1613 = vmatmul.mubr.msk.f32.gmra.mrb[26].mxu0 %vm394_vm1, %v357_v19 }
 0x135   : > { %644 = vmatprep.mubr.f32.mxu0 %v2196_v0 }
 0x137   : > { %v358_v20 = vpop.trf.xlu0 }
 0x138   : > { %1614 = vmatmul.mubr.msk.f32.gmra.mrb[28].mxu0 %vm394_vm1, %v358_v20 }
 0x139   : > { %650 = vmatprep.mubr.f32.mxu0 %v2196_v0 }
 0x13b   : > { %v359_v21 = vpop.trf.xlu0 }
 0x13c   : > { %1615 = vmatmul.mubr.msk.f32.gmra.mrb[30].mxu0 %vm394_vm1, %v359_v21 }
 0x13d   : > { %656 = vmatprep.mubr.f32.mxu0 %v2196_v0 }
 0x13f   : > { %v376_v22 = vpop.trf.xlu0 }
 0x140   : > { %1616 = vmatmul.mubr.msk.f32.gmra.mrb[32].mxu0 %vm394_vm1, %v376_v22 }
 0x141   : > { %662 = vmatprep.mubr.f32.mxu0 %v2196_v0 }
 0x143   : > { %v377_v23 = vpop.trf.xlu0 }
 0x144   : > { %1617 = vmatmul.mubr.msk.f32.gmra.mrb[34].mxu0 %vm394_vm1, %v377_v23 }
 0x145   : > { %668 = vmatprep.mubr.f32.mxu0 %v2196_v0 }
 0x147   : > { %v378_v24 = vpop.trf.xlu0 }
 0x148   : > { %1618 = vmatmul.mubr.msk.f32.gmra.mrb[36].mxu0 %vm394_vm1, %v378_v24 }
 0x149   : > { %674 = vmatprep.mubr.f32.mxu0 %v2196_v0 }
 0x14b   : > { %v379_v25 = vpop.trf.xlu0 }
 0x14c   : > { %1619 = vmatmul.mubr.msk.f32.gmra.mrb[38].mxu0 %vm394_vm1, %v379_v25 }
 0x14d   : > { %680 = vmatprep.mubr.f32.mxu0 %v2196_v0 }
 0x14f   : > { %v380_v26 = vpop.trf.xlu0 }
 0x150   : > { %1620 = vmatmul.mubr.msk.f32.gmra.mrb[40].mxu0 %vm394_vm1, %v380_v26 }
 0x151   : > { %686 = vmatprep.mubr.f32.mxu0 %v2196_v0 }
 0x153   : > { %v381_v27 = vpop.trf.xlu0 }
 0x154   : > { %1621 = vmatmul.mubr.msk.f32.gmra.mrb[42].mxu0 %vm394_vm1, %v381_v27 }
 0x155   : > { %692 = vmatprep.mubr.f32.mxu0 %v2196_v0 }
 0x157   : > { %v382_v28 = vpop.trf.xlu0 }
 0x158   : > { %1622 = vmatmul.mubr.msk.f32.gmra.mrb[44].mxu0 %vm394_vm1, %v382_v28 }
 0x159   : > { %698 = vmatprep.mubr.f32.mxu0 %v2196_v0 }
 0x15b   : > { %v383_v29 = vpop.trf.xlu0 }
 0x15c   : > { %1623 = vmatmul.mubr.msk.f32.gmra.mrb[46].mxu0 %vm394_vm1, %v383_v29 }
 0x15d   : > { %704 = vmatprep.mubr.f32.mxu0 %v2196_v0 }
 0x15f   : > { %v384_v30 = vpop.trf.xlu0 }
 0x160   : > { %1624 = vmatmul.mubr.msk.f32.gmra.mrb[48].mxu0 %vm394_vm1, %v384_v30 }
 0x161   : > { %710 = vmatprep.mubr.f32.mxu0 %v2196_v0 }
 0x163   : > { %v385_v31 = vpop.trf.xlu0 }
 0x164   : > { %1625 = vmatmul.mubr.msk.f32.gmra.mrb[50].mxu0 %vm394_vm1, %v385_v31 }
 0x165   : > { %716 = vmatprep.mubr.f32.mxu0 %v2196_v0 }
 0x167   : > { %v386_v32 = vpop.trf.xlu0 }
 0x168   : > { %1626 = vmatmul.mubr.msk.f32.gmra.mrb[52].mxu0 %vm394_vm1, %v386_v32 }
 0x169   : > { %722 = vmatprep.mubr.f32.mxu0 %v2196_v0 }
 0x16b   : > { %v387_v33 = vpop.trf.xlu0 }
 0x16c   : > { %1627 = vmatmul.mubr.msk.f32.gmra.mrb[54].mxu0 %vm394_vm1, %v387_v33 }
 0x16d   : > { %728 = vmatprep.mubr.f32.mxu0 %v2196_v0 }
 0x16f   : > { %v388_v34 = vpop.trf.xlu0 }
 0x170   : > { %1628 = vmatmul.mubr.msk.f32.gmra.mrb[56].mxu0 %vm394_vm1, %v388_v34 }
 0x171   : > { %734 = vmatprep.mubr.f32.mxu0 %v2196_v0 }
 0x173   : > { %v389_v35 = vpop.trf.xlu0 }
 0x174   : > { %1629 = vmatmul.mubr.msk.f32.gmra.mrb[58].mxu0 %vm394_vm1, %v389_v35 }
 0x175   : > { %740 = vmatprep.mubr.f32.mxu0 %v2196_v0 }
 0x177   : > { %v390_v36 = vpop.trf.xlu0 }
 0x178   : > { %1630 = vmatmul.mubr.msk.f32.gmra.mrb[60].mxu0 %vm394_vm1, %v390_v36 }
 0x179   : > { %746 = vmatprep.mubr.f32.mxu0 %v2196_v0 }
 0x17b   : > { %v391_v37 = vpop.trf.xlu0 }
 0x17c   : > { %1631 = vmatmul.mubr.msk.f32.gmra.mrb[62].mxu0 %vm394_vm1, %v391_v37 }
 0x1d3   : > { %v2499_v38 = vpop.f32.mrb[0].mxu0 }
 0x1d4   : > { %v2501_v39 = vpop.f32.mrb[1].mxu0 }
 0x1d5   : > { %v753_v40 = vmax.f32 %v2499_v38, %v2501_v39 }
 0x1d7   : > { %754 = vmax.xlane.f32.xlu1 %v753_v40  ;;  %v2505_v41 = vpop.f32.mrb[2].mxu0 }
 0x1d8   : > { %v2507_v42 = vpop.f32.mrb[3].mxu0 }
 0x1d9   : > { %v756_v43 = vmax.f32 %v2505_v41, %v2507_v42 }
 0x1db   : > { %757 = vmax.xlane.f32.xlu1 %v756_v43  ;;  %v2511_v44 = vpop.f32.mrb[4].mxu0 }
 0x1dc   : > { %v2513_v45 = vpop.f32.mrb[5].mxu0 }
 0x1dd   : > { %v759_v46 = vmax.f32 %v2511_v44, %v2513_v45 }
 0x1df   : > { %760 = vmax.xlane.f32.xlu1 %v759_v46  ;;  %v2517_v47 = vpop.f32.mrb[6].mxu0 }
 0x1e0   : > { %v2519_v48 = vpop.f32.mrb[7].mxu0 }
 0x1e1   : > { %v762_v49 = vmax.f32 %v2517_v47, %v2519_v48 }
 0x1e3   : > { %763 = vmax.xlane.f32.xlu1 %v762_v49  ;;  %v2523_v50 = vpop.f32.mrb[8].mxu0 }
 0x1e4   : > { %v2525_v51 = vpop.f32.mrb[9].mxu0 }
 0x1e5   : > { %v765_v52 = vmax.f32 %v2523_v50, %v2525_v51 }
 0x1e7   : > { %766 = vmax.xlane.f32.xlu1 %v765_v52  ;;  %v2529_v53 = vpop.f32.mrb[10].mxu0 }
 0x1e8   : > { %v2531_v54 = vpop.f32.mrb[11].mxu0 }
 0x1e9   : > { %v768_v55 = vmax.f32 %v2529_v53, %v2531_v54 }
 0x1eb   : > { %769 = vmax.xlane.f32.xlu1 %v768_v55  ;;  %v2535_v56 = vpop.f32.mrb[12].mxu0 }
 0x1ec   : > { %v2537_v57 = vpop.f32.mrb[13].mxu0 }
 0x1ed   : > { %v771_v58 = vmax.f32 %v2535_v56, %v2537_v57 }
 0x1ef   : > { %772 = vmax.xlane.f32.xlu1 %v771_v58  ;;  %v2541_v59 = vpop.f32.mrb[14].mxu0 }
 0x1f0   : > { %v2543_v60 = vpop.f32.mrb[15].mxu0 }
 0x1f1   : > { %v774_v61 = vmax.f32 %v2541_v59, %v2543_v60 }
 0x1f3   : > { %775 = vmax.xlane.f32.xlu1 %v774_v61  ;;  %v2547_v62 = vpop.f32.mrb[16].mxu0 }
 0x1f4   : > { %v2549_v63 = vpop.f32.mrb[17].mxu0 }
 0x1f5   : > { %v777_v0 = vmax.f32 %v2547_v62, %v2549_v63 }
 0x1f7   : > { %778 = vmax.xlane.f32.xlu1 %v777_v0  ;;  %v2553_v1 = vpop.f32.mrb[18].mxu0 }
 0x1f8   : > { %v2555_v2 = vpop.f32.mrb[19].mxu0 }
 0x1f9   : > { %v780_v3 = vmax.f32 %v2553_v1, %v2555_v2 }
 0x1fb   : > { %781 = vmax.xlane.f32.xlu1 %v780_v3  ;;  %v2559_v4 = vpop.f32.mrb[20].mxu0 }
 0x1fc   : > { %v2561_v5 = vpop.f32.mrb[21].mxu0 }
 0x1fd   : > { %v783_v6 = vmax.f32 %v2559_v4, %v2561_v5 }
 0x1ff   : > { %784 = vmax.xlane.f32.xlu1 %v783_v6  ;;  %v2565_v7 = vpop.f32.mrb[22].mxu0 }
 0x200   : > { %v2567_v8 = vpop.f32.mrb[23].mxu0 }
 0x201   : > { %v786_v9 = vmax.f32 %v2565_v7, %v2567_v8 }
 0x203   : > { %787 = vmax.xlane.f32.xlu1 %v786_v9  ;;  %v2571_v10 = vpop.f32.mrb[24].mxu0 }
 0x204   : > { %v2573_v11 = vpop.f32.mrb[25].mxu0 }
 0x205   : > { %v789_v12 = vmax.f32 %v2571_v10, %v2573_v11 }
 0x207   : > { %790 = vmax.xlane.f32.xlu1 %v789_v12  ;;  %v2577_v13 = vpop.f32.mrb[26].mxu0 }
 0x208   : > { %v2579_v14 = vpop.f32.mrb[27].mxu0 }
 0x209   : > { %v792_v15 = vmax.f32 %v2577_v13, %v2579_v14 }
 0x20b   : > { %793 = vmax.xlane.f32.xlu1 %v792_v15  ;;  %v2583_v16 = vpop.f32.mrb[28].mxu0 }
 0x20c   : > { %v2585_v17 = vpop.f32.mrb[29].mxu0 }
 0x20d   : > { %v795_v18 = vmax.f32 %v2583_v16, %v2585_v17 }
 0x20f   : > { %796 = vmax.xlane.f32.xlu1 %v795_v18  ;;  %v2589_v19 = vpop.f32.mrb[30].mxu0 }
 0x210   : > { %v2591_v20 = vpop.f32.mrb[31].mxu0 }
 0x211   : > { %v798_v21 = vmax.f32 %v2589_v19, %v2591_v20 }
 0x213   : > { %799 = vmax.xlane.f32.xlu1 %v798_v21  ;;  %v2595_v22 = vpop.f32.mrb[32].mxu0 }
 0x214   : > { %v2597_v23 = vpop.f32.mrb[33].mxu0 }
 0x215   : > { %v801_v24 = vmax.f32 %v2595_v22, %v2597_v23 }
 0x217   : > { %802 = vmax.xlane.f32.xlu1 %v801_v24  ;;  %v2601_v25 = vpop.f32.mrb[34].mxu0 }
 0x218   : > { %v2603_v26 = vpop.f32.mrb[35].mxu0 }
 0x219   : > { %v804_v27 = vmax.f32 %v2601_v25, %v2603_v26 }
 0x21b   : > { %805 = vmax.xlane.f32.xlu0 %v804_v27  ;;  %v2607_v28 = vpop.f32.mrb[36].mxu0 }
 0x21c   : > { %v2609_v29 = vpop.f32.mrb[37].mxu0 }
 0x21d   : > { %v807_v30 = vmax.f32 %v2607_v28, %v2609_v29 }
 0x21f   : > { %808 = vmax.xlane.f32.xlu1 %v807_v30  ;;  %v2613_v31 = vpop.f32.mrb[38].mxu0 }
 0x220   : > { %v2615_v32 = vpop.f32.mrb[39].mxu0 }
 0x221   : > { %v810_v33 = vmax.f32 %v2613_v31, %v2615_v32 }
 0x223   : > { %811 = vmax.xlane.f32.xlu1 %v810_v33  ;;  %v2619_v34 = vpop.f32.mrb[40].mxu0 }
 0x224   : > { %v2621_v35 = vpop.f32.mrb[41].mxu0 }
 0x225   : > { %v813_v36 = vmax.f32 %v2619_v34, %v2621_v35 }
 0x227   : > { %814 = vmax.xlane.f32.xlu1 %v813_v36  ;;  %v2625_v37 = vpop.f32.mrb[42].mxu0 }
 0x228   : > { %v2627_v40 = vpop.f32.mrb[43].mxu0 }
 0x229   : > { %v816_v43 = vmax.f32 %v2625_v37, %v2627_v40 }
 0x22b   : > { %817 = vmax.xlane.f32.xlu1 %v816_v43  ;;  %v2631_v46 = vpop.f32.mrb[44].mxu0 }
 0x22c   : > { %v2633_v49 = vpop.f32.mrb[45].mxu0 }
 0x22d   : > { %v819_v52 = vmax.f32 %v2631_v46, %v2633_v49 }
 0x22f   : > { %820 = vmax.xlane.f32.xlu1 %v819_v52  ;;  %v2637_v55 = vpop.f32.mrb[46].mxu0 }
 0x230   : > { %v2639_v58 = vpop.f32.mrb[47].mxu0 }
 0x231   : > { %v822_v61 = vmax.f32 %v2637_v55, %v2639_v58 }
 0x233   : > { %823 = vmax.xlane.f32.xlu1 %v822_v61  ;;  %v2643_v0 = vpop.f32.mrb[48].mxu0 }
 0x234   : > { %v2645_v3 = vpop.f32.mrb[49].mxu0 }
 0x235   : > { %v825_v6 = vmax.f32 %v2643_v0, %v2645_v3 }
 0x237   : > { %826 = vmax.xlane.f32.xlu1 %v825_v6  ;;  %v2649_v9 = vpop.f32.mrb[50].mxu0 }
 0x238   : > { %3228 = vst [vmem:[#allocation19_spill] sm:$0xff] %v2649_v9  ;;  %v2651_v12 = vpop.f32.mrb[51].mxu0 }
 0x239   : > { %3229 = vst [vmem:[#allocation20_spill] sm:$0xff] %v2651_v12  ;;  %v828_v15 = vmax.f32 %v2649_v9, %v2651_v12 }
 0x23b   : > { %829 = vmax.xlane.f32.xlu1 %v828_v15  ;;  %v2655_v18 = vpop.f32.mrb[52].mxu0 }
 0x23c   : > { %3230 = vst [vmem:[#allocation21_spill] sm:$0xff] %v2655_v18  ;;  %v2657_v21 = vpop.f32.mrb[53].mxu0 }
 0x23d   : > { %3231 = vst [vmem:[#allocation22_spill] sm:$0xff] %v2657_v21  ;;  %v831_v24 = vmax.f32 %v2655_v18, %v2657_v21 }
 0x23f   : > { %832 = vmax.xlane.f32.xlu1 %v831_v24  ;;  %v2661_v27 = vpop.f32.mrb[54].mxu0 }
 0x240   : > { %3232 = vst [vmem:[#allocation23_spill] sm:$0xff] %v2661_v27  ;;  %v2663_v30 = vpop.f32.mrb[55].mxu0 }
 0x241   : > { %3233 = vst [vmem:[#allocation24_spill] sm:$0xff] %v2663_v30  ;;  %v834_v33 = vmax.f32 %v2661_v27, %v2663_v30 }
 0x243   : > { %835 = vmax.xlane.f32.xlu1 %v834_v33  ;;  %v2667_v36 = vpop.f32.mrb[56].mxu0 }
 0x244   : > { %3234 = vst [vmem:[#allocation25_spill] sm:$0xff] %v2667_v36  ;;  %v2669_v43 = vpop.f32.mrb[57].mxu0 }
 0x245   : > { %3235 = vst [vmem:[#allocation26_spill] sm:$0xff] %v2669_v43  ;;  %v837_v52 = vmax.f32 %v2667_v36, %v2669_v43 }
 0x247   : > { %838 = vmax.xlane.f32.xlu1 %v837_v52  ;;  %v2673_v61 = vpop.f32.mrb[58].mxu0 }
 0x248   : > { %3236 = vst [vmem:[#allocation27_spill] sm:$0xff] %v2673_v61  ;;  %v2675_v6 = vpop.f32.mrb[59].mxu0 }
 0x249   : > { %3237 = vst [vmem:[#allocation28_spill] sm:$0xff] %v2675_v6  ;;  %v840_v15 = vmax.f32 %v2673_v61, %v2675_v6 }
 0x24b   : > { %841 = vmax.xlane.f32.xlu1 %v840_v15  ;;  %v2679_v24 = vpop.f32.mrb[60].mxu0 }
 0x24c   : > { %3238 = vst [vmem:[#allocation29_spill] sm:$0xff] %v2679_v24  ;;  %v2681_v30 = vpop.f32.mrb[61].mxu0 }
 0x24d   : > { %3239 = vst [vmem:[#allocation30_spill] sm:$0xff] %v2681_v30  ;;  %v843_v33 = vmax.f32 %v2679_v24, %v2681_v30 }
 0x24f   : > { %844 = vmax.xlane.f32.xlu1 %v843_v33  ;;  %v2685_v27 = vpop.f32.mrb[62].mxu0 }
 0x250   : > { %v2687_v43 = vpop.f32.mrb[63].mxu0 }
 0x251   : > { %3240 = vst [vmem:[#allocation31_spill] sm:$0xff] %v2687_v43  ;;  %v846_v52 = vmax.f32 %v2685_v27, %v2687_v43 }
 0x253   : > { %847 = vmax.xlane.f32.xlu1 %v846_v52 }
 0x264   : > { %v755_v36 = vpop.xlane.xlu1 %754 }
 0x265   : > { %v849_v6 = vsub.f32 %v2499_v38, %v755_v36  ;;  %v850_v15 = vsub.f32 %v2501_v39, %v755_v36 }
 0x267   : > { %v913_v61 = vmul.f32 1.442695, %v849_v6  ;;  %v915_v21 = vmul.f32 1.442695, %v850_v15 }
 0x268   : > { %v758_v18 = vpop.xlane.xlu1 %757 }
 0x269   : > { %1791 = vpow2.f32 %v913_v61  ;;  %v851_v30 = vsub.f32 %v2505_v41, %v758_v18  ;;  %v852_v33 = vsub.f32 %v2507_v42, %v758_v18 }
 0x26a   : > { %1793 = vpow2.f32 %v915_v21 }
 0x26b   : > { %v917_v24 = vmul.f32 1.442695, %v851_v30  ;;  %v919_v12 = vmul.f32 1.442695, %v852_v33 }
 0x26c   : > { %v761_v9 = vpop.xlane.xlu1 %760 }
 0x26d   : > { %1795 = vpow2.f32 %v917_v24  ;;  %v853_v52 = vsub.f32 %v2511_v44, %v761_v9  ;;  %v854_v43 = vsub.f32 %v2513_v45, %v761_v9 }
 0x26e   : > { %1797 = vpow2.f32 %v919_v12 }
 0x26f   : > { %v921_v38 = vmul.f32 1.442695, %v853_v52  ;;  %v923_v39 = vmul.f32 1.442695, %v854_v43 }
 0x270   : > { %v764_v36 = vpop.xlane.xlu1 %763 }
 0x271   : > { %1799 = vpow2.f32 %v921_v38  ;;  %v855_v61 = vsub.f32 %v2517_v47, %v764_v36  ;;  %v856_v41 = vsub.f32 %v2519_v48, %v764_v36 }
 0x272   : > { %1801 = vpow2.f32 %v923_v39 }
 0x273   : > { %v2699_v42 = vpop.eup %1791  ;;  %v925_v18 = vmul.f32 1.442695, %v855_v61  ;;  %v927_v21 = vmul.f32 1.442695, %v856_v41 }
 0x274   : > { %v2701_v30 = vpop.eup %1793  ;;  %v767_v6 = vpop.xlane.xlu1 %766 }
 0x275   : > { %1803 = vpow2.f32 %v925_v18  ;;  %v857_v44 = vsub.f32 %v2523_v50, %v767_v6  ;;  %v858_v45 = vsub.f32 %v2525_v51, %v767_v6  ;;  %v1041_v9 = vadd.f32 %v2701_v30, %v2699_v42 }
 0x276   : > { %1805 = vpow2.f32 %v927_v21 }
 0x277   : > { %v2707_v47 = vpop.eup %1795  ;;  %v929_v48 = vmul.f32 1.442695, %v857_v44  ;;  %v931_v12 = vmul.f32 1.442695, %v858_v45  ;;  %1042 = vadd.xlane.f32.xlu1 %v1041_v9 }
 0x278   : > { %v2709_v43 = vpop.eup %1797  ;;  %v770_v24 = vpop.xlane.xlu1 %769 }
 0x279   : > { %1807 = vpow2.f32 %v929_v48  ;;  %v859_v15 = vsub.f32 %v2529_v53, %v770_v24  ;;  %v860_v33 = vsub.f32 %v2531_v54, %v770_v24  ;;  %v1044_v50 = vadd.f32 %v2709_v43, %v2707_v47 }
 0x27a   : > { %1809 = vpow2.f32 %v931_v12 }
 0x27b   : > { %v2715_v51 = vpop.eup %1799  ;;  %v933_v52 = vmul.f32 1.442695, %v859_v15  ;;  %v935_v38 = vmul.f32 1.442695, %v860_v33  ;;  %1045 = vadd.xlane.f32.xlu1 %v1044_v50 }
 0x27c   : > { %v2717_v39 = vpop.eup %1801  ;;  %v773_v36 = vpop.xlane.xlu1 %772 }
 0x27d   : > { %1811 = vpow2.f32 %v933_v52  ;;  %v861_v61 = vsub.f32 %v2535_v56, %v773_v36  ;;  %v862_v41 = vsub.f32 %v2537_v57, %v773_v36  ;;  %v1047_v53 = vadd.f32 %v2717_v39, %v2715_v51 }
 0x27e   : > { %1813 = vpow2.f32 %v935_v38 }
 0x27f   : > { %v2723_v54 = vpop.eup %1803  ;;  %v937_v18 = vmul.f32 1.442695, %v861_v61  ;;  %v939_v21 = vmul.f32 1.442695, %v862_v41  ;;  %1048 = vadd.xlane.f32.xlu1 %v1047_v53 }
 0x280   : > { %v2725_v6 = vpop.eup %1805  ;;  %v776_v44 = vpop.xlane.xlu1 %775 }
 0x281   : > { %1815 = vpow2.f32 %v937_v18  ;;  %v863_v45 = vsub.f32 %v2541_v59, %v776_v44  ;;  %v864_v9 = vsub.f32 %v2543_v60, %v776_v44  ;;  %v1050_v56 = vadd.f32 %v2725_v6, %v2723_v54 }
 0x282   : > { %1817 = vpow2.f32 %v939_v21 }
 0x283   : > { %v2731_v57 = vpop.eup %1807  ;;  %v941_v48 = vmul.f32 1.442695, %v863_v45  ;;  %v943_v12 = vmul.f32 1.442695, %v864_v9  ;;  %1051 = vadd.xlane.f32.xlu1 %v1050_v56 }
 0x284   : > { %v2733_v24 = vpop.eup %1809  ;;  %v779_v15 = vpop.xlane.xlu1 %778 }
 0x285   : > { %1819 = vpow2.f32 %v941_v48  ;;  %v865_v33 = vsub.f32 %v2547_v62, %v779_v15  ;;  %v866_v50 = vsub.f32 %v2549_v63, %v779_v15  ;;  %v1053_v59 = vadd.f32 %v2733_v24, %v2731_v57 }
 0x286   : > { %1821 = vpow2.f32 %v943_v12 }
 0x287   : > { %v2739_v60 = vpop.eup %1811  ;;  %v945_v52 = vmul.f32 1.442695, %v865_v33  ;;  %v947_v38 = vmul.f32 1.442695, %v866_v50  ;;  %1054 = vadd.xlane.f32.xlu1 %v1053_v59 }
 0x288   : > { %v2741_v36 = vpop.eup %1813  ;;  %v782_v61 = vpop.xlane.xlu1 %781 }
 0x289   : > { %1823 = vpow2.f32 %v945_v52  ;;  %v867_v41 = vsub.f32 %v2553_v1, %v782_v61  ;;  %v868_v53 = vsub.f32 %v2555_v2, %v782_v61  ;;  %v1056_v62 = vadd.f32 %v2741_v36, %v2739_v60 }
 0x28a   : > { %1825 = vpow2.f32 %v947_v38 }
 0x28b   : > { %v2747_v63 = vpop.eup %1815  ;;  %v949_v18 = vmul.f32 1.442695, %v867_v41  ;;  %v951_v21 = vmul.f32 1.442695, %v868_v53  ;;  %1057 = vadd.xlane.f32.xlu1 %v1056_v62 }
 0x28c   : > { %v2749_v44 = vpop.eup %1817  ;;  %v785_v45 = vpop.xlane.xlu1 %784 }
 0x28d   : > { %1827 = vpow2.f32 %v949_v18  ;;  %v869_v9 = vsub.f32 %v2559_v4, %v785_v45  ;;  %v870_v56 = vsub.f32 %v2561_v5, %v785_v45  ;;  %v1059_v1 = vadd.f32 %v2749_v44, %v2747_v63 }
 0x28e   : > { %1829 = vpow2.f32 %v951_v21 }
 0x28f   : > { %v2755_v2 = vpop.eup %1819  ;;  %v953_v48 = vmul.f32 1.442695, %v869_v9  ;;  %v955_v12 = vmul.f32 1.442695, %v870_v56  ;;  %1060 = vadd.xlane.f32.xlu1 %v1059_v1 }
 0x290   : > { %v2757_v15 = vpop.eup %1821  ;;  %v788_v33 = vpop.xlane.xlu1 %787 }
 0x291   : > { %1831 = vpow2.f32 %v953_v48  ;;  %v871_v50 = vsub.f32 %v2565_v7, %v788_v33  ;;  %v872_v59 = vsub.f32 %v2567_v8, %v788_v33  ;;  %v1062_v4 = vadd.f32 %v2757_v15, %v2755_v2 }
 0x292   : > { %1833 = vpow2.f32 %v955_v12 }
 0x293   : > { %v2763_v5 = vpop.eup %1823  ;;  %v957_v52 = vmul.f32 1.442695, %v871_v50  ;;  %v959_v38 = vmul.f32 1.442695, %v872_v59  ;;  %1063 = vadd.xlane.f32.xlu1 %v1062_v4 }
 0x294   : > { %v2765_v61 = vpop.eup %1825  ;;  %v791_v41 = vpop.xlane.xlu1 %790 }
 0x295   : > { %1835 = vpow2.f32 %v957_v52  ;;  %v873_v53 = vsub.f32 %v2571_v10, %v791_v41  ;;  %v874_v62 = vsub.f32 %v2573_v11, %v791_v41  ;;  %v1065_v7 = vadd.f32 %v2765_v61, %v2763_v5 }
 0x296   : > { %1837 = vpow2.f32 %v959_v38 }
 0x297   : > { %v2771_v8 = vpop.eup %1827  ;;  %v961_v18 = vmul.f32 1.442695, %v873_v53  ;;  %v963_v21 = vmul.f32 1.442695, %v874_v62  ;;  %1066 = vadd.xlane.f32.xlu1 %v1065_v7 }
 0x298   : > { %v2773_v45 = vpop.eup %1829  ;;  %v794_v9 = vpop.xlane.xlu1 %793 }
 0x299   : > { %1839 = vpow2.f32 %v961_v18  ;;  %v875_v56 = vsub.f32 %v2577_v13, %v794_v9  ;;  %v876_v1 = vsub.f32 %v2579_v14, %v794_v9  ;;  %v1068_v10 = vadd.f32 %v2773_v45, %v2771_v8 }
 0x29a   : > { %1841 = vpow2.f32 %v963_v21 }
 0x29b   : > { %v2779_v11 = vpop.eup %1831  ;;  %v965_v48 = vmul.f32 1.442695, %v875_v56  ;;  %v967_v12 = vmul.f32 1.442695, %v876_v1  ;;  %1069 = vadd.xlane.f32.xlu1 %v1068_v10 }
 0x29c   : > { %v2781_v33 = vpop.eup %1833  ;;  %v797_v50 = vpop.xlane.xlu1 %796 }
 0x29d   : > { %1843 = vpow2.f32 %v965_v48  ;;  %v877_v59 = vsub.f32 %v2583_v16, %v797_v50  ;;  %v878_v4 = vsub.f32 %v2585_v17, %v797_v50  ;;  %v1071_v13 = vadd.f32 %v2781_v33, %v2779_v11 }
 0x29e   : > { %1845 = vpow2.f32 %v967_v12 }
 0x29f   : > { %v2787_v14 = vpop.eup %1835  ;;  %v969_v52 = vmul.f32 1.442695, %v877_v59  ;;  %v971_v38 = vmul.f32 1.442695, %v878_v4  ;;  %1072 = vadd.xlane.f32.xlu1 %v1071_v13 }
 0x2a0   : > { %v2789_v41 = vpop.eup %1837  ;;  %v800_v53 = vpop.xlane.xlu1 %799 }
 0x2a1   : > { %1847 = vpow2.f32 %v969_v52  ;;  %v879_v62 = vsub.f32 %v2589_v19, %v800_v53  ;;  %v880_v7 = vsub.f32 %v2591_v20, %v800_v53  ;;  %v1074_v16 = vadd.f32 %v2789_v41, %v2787_v14 }
 0x2a2   : > { %1849 = vpow2.f32 %v971_v38 }
 0x2a3   : > { %v2795_v17 = vpop.eup %1839  ;;  %v973_v18 = vmul.f32 1.442695, %v879_v62  ;;  %v975_v21 = vmul.f32 1.442695, %v880_v7  ;;  %1075 = vadd.xlane.f32.xlu1 %v1074_v16 }
 0x2a4   : > { %v2797_v9 = vpop.eup %1841  ;;  %v803_v56 = vpop.xlane.xlu1 %802 }
 0x2a5   : > { %1851 = vpow2.f32 %v973_v18  ;;  %v881_v1 = vsub.f32 %v2595_v22, %v803_v56  ;;  %v882_v10 = vsub.f32 %v2597_v23, %v803_v56  ;;  %v1077_v19 = vadd.f32 %v2797_v9, %v2795_v17 }
 0x2a6   : > { %1853 = vpow2.f32 %v975_v21 }
 0x2a7   : > { %v2803_v20 = vpop.eup %1843  ;;  %v977_v48 = vmul.f32 1.442695, %v881_v1  ;;  %v979_v12 = vmul.f32 1.442695, %v882_v10  ;;  %1078 = vadd.xlane.f32.xlu0 %v1077_v19 }
 0x2a8   : > { %v2805_v50 = vpop.eup %1845  ;;  %v806_v59 = vpop.xlane.xlu0 %805 }
 0x2a9   : > { %1855 = vpow2.f32 %v977_v48  ;;  %v883_v4 = vsub.f32 %v2601_v25, %v806_v59  ;;  %v884_v13 = vsub.f32 %v2603_v26, %v806_v59  ;;  %v1080_v22 = vadd.f32 %v2805_v50, %v2803_v20 }
 0x2aa   : > { %1857 = vpow2.f32 %v979_v12 }
 0x2ab   : > { %v2811_v23 = vpop.eup %1847  ;;  %v981_v52 = vmul.f32 1.442695, %v883_v4  ;;  %v983_v38 = vmul.f32 1.442695, %v884_v13  ;;  %1081 = vadd.xlane.f32.xlu1 %v1080_v22 }
 0x2ac   : > { %v2813_v53 = vpop.eup %1849  ;;  %v809_v62 = vpop.xlane.xlu1 %808 }
 0x2ad   : > { %1859 = vpow2.f32 %v981_v52  ;;  %v885_v7 = vsub.f32 %v2607_v28, %v809_v62  ;;  %v886_v16 = vsub.f32 %v2609_v29, %v809_v62  ;;  %v1083_v25 = vadd.f32 %v2813_v53, %v2811_v23 }
 0x2ae   : > { %1861 = vpow2.f32 %v983_v38 }
 0x2af   : > { %v2819_v26 = vpop.eup %1851  ;;  %v985_v18 = vmul.f32 1.442695, %v885_v7  ;;  %v987_v21 = vmul.f32 1.442695, %v886_v16  ;;  %1084 = vadd.xlane.f32.xlu0 %v1083_v25 }
 0x2b0   : > { %v2821_v56 = vpop.eup %1853  ;;  %v812_v1 = vpop.xlane.xlu1 %811 }
 0x2b1   : > { %1863 = vpow2.f32 %v985_v18  ;;  %v887_v10 = vsub.f32 %v2613_v31, %v812_v1  ;;  %v888_v19 = vsub.f32 %v2615_v32, %v812_v1  ;;  %v1086_v28 = vadd.f32 %v2821_v56, %v2819_v26 }
 0x2b2   : > { %1865 = vpow2.f32 %v987_v21 }
 0x2b3   : > { %v2827_v29 = vpop.eup %1855  ;;  %v989_v48 = vmul.f32 1.442695, %v887_v10  ;;  %v991_v12 = vmul.f32 1.442695, %v888_v19  ;;  %1087 = vadd.xlane.f32.xlu1 %v1086_v28 }
 0x2b4   : > { %v2829_v59 = vpop.eup %1857  ;;  %v815_v4 = vpop.xlane.xlu1 %814 }
 0x2b5   : > { %1867 = vpow2.f32 %v989_v48  ;;  %v889_v13 = vsub.f32 %v2619_v34, %v815_v4  ;;  %v890_v22 = vsub.f32 %v2621_v35, %v815_v4  ;;  %v1089_v31 = vadd.f32 %v2829_v59, %v2827_v29 }
 0x2b6   : > { %1869 = vpow2.f32 %v991_v12 }
 0x2b7   : > { %v2835_v32 = vpop.eup %1859  ;;  %v993_v52 = vmul.f32 1.442695, %v889_v13  ;;  %v995_v38 = vmul.f32 1.442695, %v890_v22  ;;  %1090 = vadd.xlane.f32.xlu0 %v1089_v31 }
 0x2b8   : > { %v2837_v62 = vpop.eup %1861  ;;  %v818_v7 = vpop.xlane.xlu1 %817 }
 0x2b9   : > { %1871 = vpow2.f32 %v993_v52  ;;  %v891_v16 = vsub.f32 %v2625_v37, %v818_v7  ;;  %v892_v25 = vsub.f32 %v2627_v40, %v818_v7  ;;  %v1092_v34 = vadd.f32 %v2837_v62, %v2835_v32 }
 0x2ba   : > { %1873 = vpow2.f32 %v995_v38 }
 0x2bb   : > { %v2843_v35 = vpop.eup %1863  ;;  %v997_v18 = vmul.f32 1.442695, %v891_v16  ;;  %v999_v21 = vmul.f32 1.442695, %v892_v25  ;;  %1093 = vadd.xlane.f32.xlu1 %v1092_v34 }
 0x2bc   : > { %v2845_v1 = vpop.eup %1865  ;;  %v821_v10 = vpop.xlane.xlu1 %820 }
 0x2bd   : > { %1875 = vpow2.f32 %v997_v18  ;;  %v893_v19 = vsub.f32 %v2631_v46, %v821_v10  ;;  %v894_v28 = vsub.f32 %v2633_v49, %v821_v10  ;;  %v1095_v37 = vadd.f32 %v2845_v1, %v2843_v35 }
 0x2be   : > { %1877 = vpow2.f32 %v999_v21 }
 0x2bf   : > { %v2851_v40 = vpop.eup %1867  ;;  %v1001_v48 = vmul.f32 1.442695, %v893_v19  ;;  %v1003_v12 = vmul.f32 1.442695, %v894_v28  ;;  %1096 = vadd.xlane.f32.xlu0 %v1095_v37  ;;  %v3241_v28 = vld [vmem:[#allocation19_spill] sm:$0xff] }
 0x2c0   : > { %v2853_v4 = vpop.eup %1869  ;;  %v824_v13 = vpop.xlane.xlu1 %823 }
 0x2c1   : > { %1879 = vpow2.f32 %v1001_v48  ;;  %v895_v22 = vsub.f32 %v2637_v55, %v824_v13  ;;  %v896_v31 = vsub.f32 %v2639_v58, %v824_v13  ;;  %v1098_v46 = vadd.f32 %v2853_v4, %v2851_v40  ;;  %v3242_v48 = vld [vmem:[#allocation20_spill] sm:$0xff] }
 0x2c2   : > { %1881 = vpow2.f32 %v1003_v12 }
 0x2c3   : > { %v2859_v49 = vpop.eup %1871  ;;  %v1005_v52 = vmul.f32 1.442695, %v895_v22  ;;  %v1007_v38 = vmul.f32 1.442695, %v896_v31  ;;  %1099 = vadd.xlane.f32.xlu1 %v1098_v46 }
 0x2c4   : > { %v2861_v7 = vpop.eup %1873  ;;  %v827_v16 = vpop.xlane.xlu1 %826 }
 0x2c5   : > { %1883 = vpow2.f32 %v1005_v52  ;;  %v897_v25 = vsub.f32 %v2643_v0, %v827_v16  ;;  %v898_v34 = vsub.f32 %v2645_v3, %v827_v16  ;;  %v1101_v55 = vadd.f32 %v2861_v7, %v2859_v49  ;;  %v3244_v52 = vld [vmem:[#allocation21_spill] sm:$0xff]  ;;  %v3245_v16 = vld [vmem:[#allocation22_spill] sm:$0xff] }
 0x2c6   : > { %1885 = vpow2.f32 %v1007_v38 }
 0x2c7   : > { %v2867_v58 = vpop.eup %1875  ;;  %v1009_v18 = vmul.f32 1.442695, %v897_v25  ;;  %v1011_v21 = vmul.f32 1.442695, %v898_v34  ;;  %1102 = vadd.xlane.f32.xlu0 %v1101_v55 }
 0x2c8   : > { %v2869_v10 = vpop.eup %1877  ;;  %v830_v19 = vpop.xlane.xlu1 %829 }
 0x2c9   : > { %1887 = vpow2.f32 %v1009_v18  ;;  %v899_v37 = vsub.f32 %v3241_v28, %v830_v19  ;;  %v900_v12 = vsub.f32 %v3242_v48, %v830_v19  ;;  %v1104_v0 = vadd.f32 %v2869_v10, %v2867_v58 }
 0x2ca   : > { %1889 = vpow2.f32 %v1011_v21 }
 0x2cb   : > { %v2875_v3 = vpop.eup %1879  ;;  %v1013_v13 = vmul.f32 1.442695, %v899_v37  ;;  %v1015_v22 = vmul.f32 1.442695, %v900_v12  ;;  %1105 = vadd.xlane.f32.xlu1 %v1104_v0  ;;  %v3248_v37 = vld [vmem:[#allocation23_spill] sm:$0xff]  ;;  %v3249_v12 = vld [vmem:[#allocation24_spill] sm:$0xff] }
 0x2cc   : > { %3243 = vst [vmem:[#allocation19_spill] sm:$0xff] %v2875_v3  ;;  %v2877_v31 = vpop.eup %1881  ;;  %v833_v46 = vpop.xlane.xlu1 %832 }
 0x2cd   : > { %1891 = vpow2.f32 %v1013_v13  ;;  %v901_v38 = vsub.f32 %v3244_v52, %v833_v46  ;;  %v902_v25 = vsub.f32 %v3245_v16, %v833_v46  ;;  %v1107_v34 = vadd.f32 %v2877_v31, %v2875_v3 }
 0x2ce   : > { %1893 = vpow2.f32 %v1015_v22 }
 0x2cf   : > { %v2883_v55 = vpop.eup %1883  ;;  %v1017_v18 = vmul.f32 1.442695, %v901_v38  ;;  %v1019_v21 = vmul.f32 1.442695, %v902_v25  ;;  %1108 = vadd.xlane.f32.xlu0 %v1107_v34  ;;  %v3252_v25 = vld [vmem:[#allocation25_spill] sm:$0xff] }
 0x2d0   : > { %3246 = vst [vmem:[#allocation20_spill] sm:$0xff] %v2883_v55  ;;  %v2885_v19 = vpop.eup %1885  ;;  %v836_v28 = vpop.xlane.xlu1 %835 }
 0x2d1   : > { %3247 = vst [vmem:[#allocation21_spill] sm:$0xff] %v2885_v19  ;;  %1895 = vpow2.f32 %v1017_v18  ;;  %v903_v48 = vsub.f32 %v3248_v37, %v836_v28  ;;  %v904_v0 = vsub.f32 %v3249_v12, %v836_v28  ;;  %v1110_v13 = vadd.f32 %v2885_v19, %v2883_v55  ;;  %v3253_v18 = vld [vmem:[#allocation26_spill] sm:$0xff] }
 0x2d2   : > { %1897 = vpow2.f32 %v1019_v21 }
 0x2d3   : > { %v2891_v46 = vpop.eup %1887  ;;  %v1021_v22 = vmul.f32 1.442695, %v903_v48  ;;  %v1023_v52 = vmul.f32 1.442695, %v904_v0  ;;  %1111 = vadd.xlane.f32.xlu1 %v1110_v13  ;;  %v3255_v13 = vld [vmem:[#allocation27_spill] sm:$0xff] }
 0x2d4   : > { %3250 = vst [vmem:[#allocation22_spill] sm:$0xff] %v2891_v46  ;;  %v2893_v38 = vpop.eup %1889  ;;  %v839_v16 = vpop.xlane.xlu1 %838 }
 0x2d5   : > { %3251 = vst [vmem:[#allocation23_spill] sm:$0xff] %v2893_v38  ;;  %1899 = vpow2.f32 %v1021_v22  ;;  %v905_v34 = vsub.f32 %v3252_v25, %v839_v16  ;;  %v906_v3 = vsub.f32 %v3253_v18, %v839_v16  ;;  %v1113_v28 = vadd.f32 %v2893_v38, %v2891_v46  ;;  %v3256_v22 = vld [vmem:[#allocation28_spill] sm:$0xff] }
 0x2d6   : > { %1901 = vpow2.f32 %v1023_v52 }
 0x2d7   : > { %v2899_v37 = vpop.eup %1891  ;;  %v1025_v21 = vmul.f32 1.442695, %v905_v34  ;;  %v1027_v12 = vmul.f32 1.442695, %v906_v3  ;;  %1114 = vadd.xlane.f32.xlu0 %v1113_v28  ;;  %v3257_v28 = vld [vmem:[#allocation29_spill] sm:$0xff] }
 0x2d8   : > { %3254 = vst [vmem:[#allocation24_spill] sm:$0xff] %v2899_v37  ;;  %v2901_v48 = vpop.eup %1893  ;;  %v842_v0 = vpop.xlane.xlu1 %841 }
 0x2d9   : > { %1903 = vpow2.f32 %v1025_v21  ;;  %v907_v55 = vsub.f32 %v3255_v13, %v842_v0  ;;  %v908_v19 = vsub.f32 %v3256_v22, %v842_v0  ;;  %v1116_v16 = vadd.f32 %v2901_v48, %v2899_v37  ;;  %v3258_v21 = vld [vmem:[#allocation30_spill] sm:$0xff] }
 0x2da   : > { %1905 = vpow2.f32 %v1027_v12 }
 0x2db   : > { %v2907_v25 = vpop.eup %1895  ;;  %v1029_v52 = vmul.f32 1.442695, %v907_v55  ;;  %v1031_v18 = vmul.f32 1.442695, %v908_v19  ;;  %1117 = vadd.xlane.f32.xlu1 %v1116_v16 }
 0x2dc   : > { %v2909_v34 = vpop.eup %1897  ;;  %v845_v3 = vpop.xlane.xlu1 %844 }
 0x2dd   : > { %1907 = vpow2.f32 %v1029_v52  ;;  %v909_v46 = vsub.f32 %v3257_v28, %v845_v3  ;;  %v910_v38 = vsub.f32 %v3258_v21, %v845_v3  ;;  %v1119_v0 = vadd.f32 %v2909_v34, %v2907_v25  ;;  %v3259_v52 = vld [vmem:[#allocation31_spill] sm:$0xff] }
 0x2de   : > { %1909 = vpow2.f32 %v1031_v18 }
 0x2df   : > { %v2915_v13 = vpop.eup %1899  ;;  %v1033_v12 = vmul.f32 1.442695, %v909_v46  ;;  %v1035_v22 = vmul.f32 1.442695, %v910_v38  ;;  %1120 = vadd.xlane.f32.xlu0 %v1119_v0 }
 0x2e0   : > { %v2917_v55 = vpop.eup %1901  ;;  %v848_v19 = vpop.xlane.xlu1 %847 }
 0x2e1   : > { %1911 = vpow2.f32 %v1033_v12  ;;  %v911_v16 = vsub.f32 %v2685_v27, %v848_v19  ;;  %v912_v37 = vsub.f32 %v3259_v52, %v848_v19  ;;  %v1122_v3 = vadd.f32 %v2917_v55, %v2915_v13 }
 0x2e2   : > { %1913 = vpow2.f32 %v1035_v22 }
 0x2e3   : > { %v2923_v28 = vpop.eup %1903  ;;  %v1037_v18 = vmul.f32 1.442695, %v911_v16  ;;  %v1039_v21 = vmul.f32 1.442695, %v912_v37  ;;  %1123 = vadd.xlane.f32.xlu1 %v1122_v3 }
 0x2e4   : > { %v2925_v46 = vpop.eup %1905 }
 0x2e5   : > { %1915 = vpow2.f32 %v1037_v18  ;;  %v1125_v38 = vadd.f32 %v2925_v46, %v2923_v28 }
 0x2e6   : > { %1917 = vpow2.f32 %v1039_v21 }
 0x2e7   : > { %v2929_v0 = vpop.eup %1907  ;;  %1126 = vadd.xlane.f32.xlu0 %v1125_v38 }
 0x2e8   : > { %3260 = vst [vmem:[#allocation25_spill] sm:$0xff] %v2929_v0  ;;  %v2931_v27 = vpop.eup %1909 }
 0x2e9   : > { %v1128_v12 = vadd.f32 %v2931_v27, %v2929_v0 }
 0x2eb   : > { %v2935_v22 = vpop.eup %1911  ;;  %1129 = vadd.xlane.f32.xlu1 %v1128_v12 }
 0x2ec   : > { %3261 = vst [vmem:[#allocation26_spill] sm:$0xff] %v2935_v22  ;;  %v2937_v37 = vpop.eup %1913 }
 0x2ed   : > { %3262 = vst [vmem:[#allocation27_spill] sm:$0xff] %v2937_v37  ;;  %v1131_v19 = vadd.f32 %v2937_v37, %v2935_v22 }
 0x2ef   : > { %v2941_v16 = vpop.eup %1915  ;;  %1132 = vadd.xlane.f32.xlu0 %v1131_v19 }
 0x2f0   : > { %3263 = vst [vmem:[#allocation28_spill] sm:$0xff] %v2941_v16  ;;  %v2943_v52 = vpop.eup %1917 }
 0x2f1   : > { %3264 = vst [vmem:[#allocation29_spill] sm:$0xff] %v2943_v52  ;;  %v1134_v3 = vadd.f32 %v2943_v52, %v2941_v16 }
 0x2f3   : > { %1135 = vadd.xlane.f32.xlu1 %v1134_v3  ;;  %v2955_v3 = vld [vmem:[%s278_s5] sm:$0xff] }
 0x2f4   : > { %3265 = vst [vmem:[#allocation30_spill] sm:$0xff] %v2955_v3 }
 0x304   : > { %v1043_v18 = vpop.xlane.xlu1 %1042 }
 0x305   : > { %1919 = vrcp.f32 %v1043_v18 }
 0x308   : > { %v1046_v21 = vpop.xlane.xlu1 %1045 }
 0x309   : > { %1921 = vrcp.f32 %v1046_v21  ;;  %v1298_v21 = vcombine.high %v2955_v3, %v2955_v3 }
 0x30b   : > { %1364 = vmatprep.mubr.f32.mxu1 %v1298_v21 }
 0x30c   : > { %v1049_v38 = vpop.xlane.xlu1 %1048 }
 0x30d   : > { %1923 = vrcp.f32 %v1049_v38 }
 0x30f   : > { %v1920_v12 = vpop.eup %1919 }
 0x310   : > { %v1052_v0 = vpop.xlane.xlu1 %1051  ;;  %v1170_v22 = vmul.f32 %v1920_v12, %v2701_v30  ;;  %v1169_v19 = vmul.f32 %v1920_v12, %v2699_v42 }
 0x311   : > { %1925 = vrcp.f32 %v1052_v0 }
 0x312   : > { %1234 = vst [vmem:[%s2950_s27 + $0x8] sm:$0xff] %v1170_v22  ;;  %1233 = vst [vmem:[%s2950_s27] sm:$0xff] %v1169_v19 }
 0x313   : > { %v1922_v18 = vpop.eup %1921 }
 0x314   : > { %v1055_v38 = vpop.xlane.xlu1 %1054  ;;  %v1172_v42 = vmul.f32 %v1922_v18, %v2709_v43  ;;  %v1171_v30 = vmul.f32 %v1922_v18, %v2707_v47 }
 0x315   : > { %1927 = vrcp.f32 %v1055_v38 }
 0x316   : > { %1236 = vst [vmem:[%s2950_s27 + $0x18] sm:$0xff] %v1172_v42  ;;  %v1645_v0 = vpack.c.bf16 %v1172_v42, %v1170_v22  ;;  %1235 = vst [vmem:[%s2950_s27 + $0x10] sm:$0xff] %v1171_v30  ;;  %v1647_v12 = vpack.c.bf16 %v1171_v30, %v1169_v19 }
 0x317   : > { %v1924_v16 = vpop.eup %1923 }
 0x318   : > { %1646 = vmatprep.subr.bf16.mxu1 %v1645_v0  ;;  %v1058_v52 = vpop.xlane.xlu1 %1057  ;;  %v1174_v3 = vmul.f32 %v1924_v16, %v2717_v39  ;;  %v1173_v37 = vmul.f32 %v1924_v16, %v2715_v51 }
 0x319   : > { %1929 = vrcp.f32 %v1058_v52  ;;  %1648 = vmatpush1.bf16.xpose.msra.mxu1 %v1647_v12 }
 0x31a   : > { %1238 = vst [vmem:[%s2950_s27 + $0x28] sm:$0xff] %v1174_v3  ;;  %1237 = vst [vmem:[%s2950_s27 + $0x20] sm:$0xff] %v1173_v37 }
 0x31b   : > { %v1926_v47 = vpop.eup %1925 }
 0x31c   : > { %v1061_v43 = vpop.xlane.xlu1 %1060  ;;  %v1176_v22 = vmul.f32 %v1926_v47, %v2725_v6  ;;  %v1175_v19 = vmul.f32 %v1926_v47, %v2723_v54 }
 0x31d   : > { %1931 = vrcp.f32 %v1061_v43 }
 0x31e   : > { %1240 = vst [vmem:[%s2950_s27 + $0x38] sm:$0xff] %v1176_v22  ;;  %v1649_v18 = vpack.c.bf16 %v1176_v22, %v1174_v3  ;;  %1239 = vst [vmem:[%s2950_s27 + $0x30] sm:$0xff] %v1175_v19  ;;  %v1651_v39 = vpack.c.bf16 %v1175_v19, %v1173_v37 }
 0x31f   : > { %v1928_v21 = vpop.eup %1927 }
 0x320   : > { %1650 = vmatprep.subr.bf16.mxu1 %v1649_v18  ;;  %v1064_v51 = vpop.xlane.xlu1 %1063  ;;  %v1178_v16 = vmul.f32 %v1928_v21, %v2733_v24  ;;  %v1177_v52 = vmul.f32 %v1928_v21, %v2731_v57 }
 0x321   : > { %1933 = vrcp.f32 %v1064_v51  ;;  %1652 = vmatpush1.bf16.xpose.msra.mxu1 %v1651_v39 }
 0x322   : > { %1242 = vst [vmem:[%s2950_s27 + $0x48] sm:$0xff] %v1178_v16  ;;  %1241 = vst [vmem:[%s2950_s27 + $0x40] sm:$0xff] %v1177_v52 }
 0x323   : > { %v1930_v6 = vpop.eup %1929 }
 0x324   : > { %v1067_v54 = vpop.xlane.xlu1 %1066  ;;  %v1180_v3 = vmul.f32 %v1930_v6, %v2741_v36  ;;  %v1179_v37 = vmul.f32 %v1930_v6, %v2739_v60 }
 0x325   : > { %1935 = vrcp.f32 %v1067_v54 }
 0x326   : > { %1244 = vst [vmem:[%s2950_s27 + $0x58] sm:$0xff] %v1180_v3  ;;  %v1653_v38 = vpack.c.bf16 %v1180_v3, %v1178_v16  ;;  %1243 = vst [vmem:[%s2950_s27 + $0x50] sm:$0xff] %v1179_v37  ;;  %v1655_v24 = vpack.c.bf16 %v1179_v37, %v1177_v52 }
 0x327   : > { %v1932_v42 = vpop.eup %1931 }
 0x328   : > { %1654 = vmatprep.subr.bf16.mxu1 %v1653_v38  ;;  %v1070_v57 = vpop.xlane.xlu1 %1069  ;;  %v1182_v30 = vmul.f32 %v1932_v42, %v2749_v44  ;;  %v1181_v0 = vmul.f32 %v1932_v42, %v2747_v63 }
 0x329   : > { %1937 = vrcp.f32 %v1070_v57  ;;  %1656 = vmatpush1.bf16.xpose.msra.mxu1 %v1655_v24 }
 0x32a   : > { %1246 = vst [vmem:[%s2950_s27 + $0x68] sm:$0xff] %v1182_v30  ;;  %1245 = vst [vmem:[%s2950_s27 + $0x60] sm:$0xff] %v1181_v0 }
 0x32b   : > { %v1934_v36 = vpop.eup %1933 }
 0x32c   : > { %v1073_v60 = vpop.xlane.xlu1 %1072  ;;  %v1184_v12 = vmul.f32 %v1934_v36, %v2757_v15  ;;  %v1183_v47 = vmul.f32 %v1934_v36, %v2755_v2 }
 0x32d   : > { %1939 = vrcp.f32 %v1073_v60 }
 0x32e   : > { %1248 = vst [vmem:[%s2950_s27 + $0x78] sm:$0xff] %v1184_v12  ;;  %v1657_v43 = vpack.c.bf16 %v1184_v12, %v1182_v30  ;;  %1247 = vst [vmem:[%s2950_s27 + $0x70] sm:$0xff] %v1183_v47  ;;  %v1659_v44 = vpack.c.bf16 %v1183_v47, %v1181_v0 }
 0x32f   : > { %v1936_v22 = vpop.eup %1935 }
 0x330   : > { %1658 = vmatprep.subr.bf16.mxu1 %v1657_v43  ;;  %v1076_v63 = vpop.xlane.xlu1 %1075  ;;  %v1186_v19 = vmul.f32 %v1936_v22, %v2765_v61  ;;  %v1185_v18 = vmul.f32 %v1936_v22, %v2763_v5 }
 0x331   : > { %1941 = vrcp.f32 %v1076_v63  ;;  %1660 = vmatpush1.bf16.xpose.msra.mxu1 %v1659_v44 }
 0x332   : > { %1250 = vst [vmem:[%s2950_s27 + $0x88] sm:$0xff] %v1186_v19  ;;  %1249 = vst [vmem:[%s2950_s27 + $0x80] sm:$0xff] %v1185_v18 }
 0x333   : > { %v1938_v15 = vpop.eup %1937 }
 0x334   : > { %v1079_v2 = vpop.xlane.xlu0 %1078  ;;  %v1188_v39 = vmul.f32 %v1938_v15, %v2773_v45  ;;  %v1187_v21 = vmul.f32 %v1938_v15, %v2771_v8 }
 0x335   : > { %1943 = vrcp.f32 %v1079_v2 }
 0x336   : > { %1252 = vst [vmem:[%s2950_s27 + $0x98] sm:$0xff] %v1188_v39  ;;  %v1661_v51 = vpack.c.bf16 %v1188_v39, %v1186_v19  ;;  %1251 = vst [vmem:[%s2950_s27 + $0x90] sm:$0xff] %v1187_v21  ;;  %v1663_v61 = vpack.c.bf16 %v1187_v21, %v1185_v18 }
 0x337   : > { %v1940_v16 = vpop.eup %1939 }
 0x338   : > { %1662 = vmatprep.subr.bf16.mxu1 %v1661_v51  ;;  %v1082_v5 = vpop.xlane.xlu1 %1081  ;;  %v1190_v52 = vmul.f32 %v1940_v16, %v2781_v33  ;;  %v1189_v6 = vmul.f32 %v1940_v16, %v2779_v11 }
 0x339   : > { %1945 = vrcp.f32 %v1082_v5  ;;  %1664 = vmatpush1.bf16.xpose.msra.mxu1 %v1663_v61 }
 0x33a   : > { %1254 = vst [vmem:[%s2950_s27 + $0xa8] sm:$0xff] %v1190_v52  ;;  %1253 = vst [vmem:[%s2950_s27 + $0xa0] sm:$0xff] %v1189_v6 }
 0x33b   : > { %v1942_v45 = vpop.eup %1941 }
 0x33c   : > { %v1085_v8 = vpop.xlane.xlu0 %1084  ;;  %v1192_v54 = vmul.f32 %v1942_v45, %v2789_v41  ;;  %v1191_v3 = vmul.f32 %v1942_v45, %v2787_v14 }
 0x33d   : > { %1947 = vrcp.f32 %v1085_v8 }
 0x33e   : > { %1256 = vst [vmem:[%s2950_s27 + $0xb8] sm:$0xff] %v1192_v54  ;;  %v1665_v37 = vpack.c.bf16 %v1192_v54, %v1190_v52  ;;  %1255 = vst [vmem:[%s2950_s27 + $0xb0] sm:$0xff] %v1191_v3  ;;  %v1667_v33 = vpack.c.bf16 %v1191_v3, %v1189_v6 }
 0x33f   : > { %v1944_v38 = vpop.eup %1943 }
 0x340   : > { %1666 = vmatprep.subr.bf16.mxu1 %v1665_v37  ;;  %v1088_v11 = vpop.xlane.xlu1 %1087  ;;  %v1194_v24 = vmul.f32 %v1944_v38, %v2797_v9  ;;  %v1193_v42 = vmul.f32 %v1944_v38, %v2795_v17  ;;  %v3266_v38 = vld [vmem:[#allocation19_spill] sm:$0xff] }
 0x341   : > { %1949 = vrcp.f32 %v1088_v11  ;;  %1668 = vmatpush1.bf16.xpose.msra.mxu1 %v1667_v33 }
 0x342   : > { %1258 = vst [vmem:[%s2950_s27 + $0xc8] sm:$0xff] %v1194_v24  ;;  %1257 = vst [vmem:[%s2950_s27 + $0xc0] sm:$0xff] %v1193_v42 }
 0x343   : > { %v1946_v41 = vpop.eup %1945 }
 0x344   : > { %v1091_v14 = vpop.xlane.xlu0 %1090  ;;  %v1196_v57 = vmul.f32 %v1946_v41, %v2805_v50  ;;  %v1195_v30 = vmul.f32 %v1946_v41, %v2803_v20  ;;  %v3268_v41 = vld [vmem:[#allocation20_spill] sm:$0xff] }
 0x345   : > { %1951 = vrcp.f32 %v1091_v14 }
 0x346   : > { %1260 = vst [vmem:[%s2950_s27 + $0xd8] sm:$0xff] %v1196_v57  ;;  %v1669_v0 = vpack.c.bf16 %v1196_v57, %v1194_v24  ;;  %1259 = vst [vmem:[%s2950_s27 + $0xd0] sm:$0xff] %v1195_v30  ;;  %v1671_v9 = vpack.c.bf16 %v1195_v30, %v1193_v42  ;;  %v3267_v24 = vld [vmem:[#allocation21_spill] sm:$0xff] }
 0x347   : > { %v1948_v36 = vpop.eup %1947 }
 0x348   : > { %v1094_v17 = vpop.xlane.xlu1 %1093  ;;  %1670 = vmatprep.subr.bf16.mxu1 %v1669_v0  ;;  %v1198_v60 = vmul.f32 %v1948_v36, %v2813_v53  ;;  %v1197_v12 = vmul.f32 %v1948_v36, %v2811_v23 }
 0x349   : > { %1953 = vrcp.f32 %v1094_v17  ;;  %1672 = vmatpush1.bf16.xpose.msra.mxu1 %v1671_v9  ;;  %v3269_v9 = vld [vmem:[#allocation23_spill] sm:$0xff]  ;;  %v3270_v17 = vld [vmem:[#allocation22_spill] sm:$0xff] }
 0x34a   : > { %1262 = vst [vmem:[%s2950_s27 + $0xe8] sm:$0xff] %v1198_v60  ;;  %1261 = vst [vmem:[%s2950_s27 + $0xe0] sm:$0xff] %v1197_v12 }
 0x34b   : > { %v1950_v50 = vpop.eup %1949 }
 0x34c   : > { %v1097_v20 = vpop.xlane.xlu0 %1096  ;;  %v1200_v47 = vmul.f32 %v1950_v50, %v2821_v56  ;;  %v1199_v43 = vmul.f32 %v1950_v50, %v2819_v26 }
 0x34d   : > { %1955 = vrcp.f32 %v1097_v20 }
 0x34e   : > { %1264 = vst [vmem:[%s2950_s27 + $0xf8] sm:$0xff] %v1200_v47  ;;  %v1673_v44 = vpack.c.bf16 %v1200_v47, %v1198_v60  ;;  %1263 = vst [vmem:[%s2950_s27 + $0xf0] sm:$0xff] %v1199_v43  ;;  %v1675_v53 = vpack.c.bf16 %v1199_v43, %v1197_v12  ;;  %v3271_v47 = vld [vmem:[#allocation24_spill] sm:$0xff] }
 0x34f   : > { %v1952_v22 = vpop.eup %1951 }
 0x350   : > { %v1100_v23 = vpop.xlane.xlu1 %1099  ;;  %1674 = vmatprep.subr.bf16.mxu1 %v1673_v44  ;;  %v1202_v63 = vmul.f32 %v1952_v22, %v2829_v59  ;;  %v1201_v19 = vmul.f32 %v1952_v22, %v2827_v29 }
 0x351   : > { %1957 = vrcp.f32 %v1100_v23  ;;  %1676 = vmatpush1.bf16.xpose.msra.mxu1 %v1675_v53 }
 0x352   : > { %1266 = vst [vmem:[%s2950_s27 + $0x108] sm:$0xff] %v1202_v63  ;;  %1265 = vst [vmem:[%s2950_s27 + $0x100] sm:$0xff] %v1201_v19 }
 0x353   : > { %v1954_v56 = vpop.eup %1953 }
 0x354   : > { %v1103_v26 = vpop.xlane.xlu0 %1102  ;;  %v1204_v18 = vmul.f32 %v1954_v56, %v2837_v62  ;;  %v1203_v15 = vmul.f32 %v1954_v56, %v2835_v32 }
 0x355   : > { %1959 = vrcp.f32 %v1103_v26 }
 0x356   : > { %1268 = vst [vmem:[%s2950_s27 + $0x118] sm:$0xff] %v1204_v18  ;;  %v1677_v2 = vpack.c.bf16 %v1204_v18, %v1202_v63  ;;  %1267 = vst [vmem:[%s2950_s27 + $0x110] sm:$0xff] %v1203_v15  ;;  %v1679_v59 = vpack.c.bf16 %v1203_v15, %v1201_v19 }
 0x357   : > { %v1956_v39 = vpop.eup %1955 }
 0x358   : > { %v1106_v29 = vpop.xlane.xlu1 %1105  ;;  %1678 = vmatprep.subr.bf16.mxu1 %v1677_v2  ;;  %v1206_v21 = vmul.f32 %v1956_v39, %v2845_v1  ;;  %v1205_v51 = vmul.f32 %v1956_v39, %v2843_v35 }
 0x359   : > { %1961 = vrcp.f32 %v1106_v29  ;;  %1680 = vmatpush1.bf16.xpose.msra.mxu1 %v1679_v59  ;;  %v3272_v29 = vld [vmem:[#allocation25_spill] sm:$0xff] }
 0x35a   : > { %1270 = vst [vmem:[%s2950_s27 + $0x128] sm:$0xff] %v1206_v21  ;;  %1269 = vst [vmem:[%s2950_s27 + $0x120] sm:$0xff] %v1205_v51 }
 0x35b   : > { %v1958_v62 = vpop.eup %1957 }
 0x35c   : > { %v1109_v32 = vpop.xlane.xlu0 %1108  ;;  %v1208_v61 = vmul.f32 %v1958_v62, %v2853_v4  ;;  %v1207_v16 = vmul.f32 %v1958_v62, %v2851_v40 }
 0x35d   : > { %1963 = vrcp.f32 %v1109_v32 }
 0x35e   : > { %1272 = vst [vmem:[%s2950_s27 + $0x138] sm:$0xff] %v1208_v61  ;;  %v1681_v5 = vpack.c.bf16 %v1208_v61, %v1206_v21  ;;  %1271 = vst [vmem:[%s2950_s27 + $0x130] sm:$0xff] %v1207_v16  ;;  %v1683_v1 = vpack.c.bf16 %v1207_v16, %v1205_v51  ;;  %v3274_v61 = vld [vmem:[#allocation26_spill] sm:$0xff] }
 0x35f   : > { %v1960_v52 = vpop.eup %1959 }
 0x360   : > { %v1112_v35 = vpop.xlane.xlu1 %1111  ;;  %1682 = vmatprep.subr.bf16.mxu1 %v1681_v5  ;;  %v1210_v6 = vmul.f32 %v1960_v52, %v2861_v7  ;;  %v1209_v45 = vmul.f32 %v1960_v52, %v2859_v49  ;;  %v3275_v5 = vld [vmem:[#allocation29_spill] sm:$0xff]  ;;  %v3276_v52 = vld [vmem:[#allocation28_spill] sm:$0xff] }
 0x361   : > { %1965 = vrcp.f32 %v1112_v35  ;;  %1684 = vmatpush1.bf16.xpose.msra.mxu1 %v1683_v1 }
 0x362   : > { %1274 = vst [vmem:[%s2950_s27 + $0x148] sm:$0xff] %v1210_v6  ;;  %1273 = vst [vmem:[%s2950_s27 + $0x140] sm:$0xff] %v1209_v45 }
 0x363   : > { %v1962_v4 = vpop.eup %1961 }
 0x364   : > { %v1115_v40 = vpop.xlane.xlu0 %1114  ;;  %v1212_v8 = vmul.f32 %v1962_v4, %v2869_v10  ;;  %v1211_v54 = vmul.f32 %v1962_v4, %v2867_v58  ;;  %v3277_v4 = vld [vmem:[#allocation30_spill] sm:$0xff] }
 0x365   : > { %1967 = vrcp.f32 %v1115_v40 }
 0x366   : > { %1276 = vst [vmem:[%s2950_s27 + $0x158] sm:$0xff] %v1212_v8  ;;  %v1685_v3 = vpack.c.bf16 %v1212_v8, %v1210_v6  ;;  %1275 = vst [vmem:[%s2950_s27 + $0x150] sm:$0xff] %v1211_v54  ;;  %v1687_v7 = vpack.c.bf16 %v1211_v54, %v1209_v45 }
 0x367   : > { %v1964_v37 = vpop.eup %1963 }
 0x368   : > { %v1118_v49 = vpop.xlane.xlu1 %1117  ;;  %1686 = vmatprep.subr.bf16.mxu1 %v1685_v3  ;;  %v1214_v33 = vmul.f32 %v1964_v37, %v2877_v31  ;;  %v1213_v11 = vmul.f32 %v1964_v37, %v3266_v38 }
 0x369   : > { %1969 = vrcp.f32 %v1118_v49  ;;  %1688 = vmatpush1.bf16.xpose.msra.mxu1 %v1687_v7 }
 0x36a   : > { %1278 = vst [vmem:[%s2950_s27 + $0x168] sm:$0xff] %v1214_v33  ;;  %1277 = vst [vmem:[%s2950_s27 + $0x160] sm:$0xff] %v1213_v11 }
 0x36b   : > { %v1966_v10 = vpop.eup %1965 }
 0x36c   : > { %v1121_v58 = vpop.xlane.xlu0 %1120  ;;  %v1216_v42 = vmul.f32 %v1966_v10, %v3267_v24  ;;  %v1215_v14 = vmul.f32 %v1966_v10, %v3268_v41 }
 0x36d   : > { %1971 = vrcp.f32 %v1121_v58 }
 0x36e   : > { %1280 = vst [vmem:[%s2950_s27 + $0x178] sm:$0xff] %v1216_v42  ;;  %v1689_v57 = vpack.c.bf16 %v1216_v42, %v1214_v33  ;;  %1279 = vst [vmem:[%s2950_s27 + $0x170] sm:$0xff] %v1215_v14  ;;  %v1691_v31 = vpack.c.bf16 %v1215_v14, %v1213_v11 }
 0x36f   : > { %v1968_v30 = vpop.eup %1967 }
 0x370   : > { %v1124_v0 = vpop.xlane.xlu1 %1123  ;;  %1690 = vmatprep.subr.bf16.mxu1 %v1689_v57  ;;  %v1218_v36 = vmul.f32 %v1968_v30, %v3269_v9  ;;  %v1217_v60 = vmul.f32 %v1968_v30, %v3270_v17 }
 0x371   : > { %1973 = vrcp.f32 %v1124_v0  ;;  %1692 = vmatpush1.bf16.xpose.msra.mxu1 %v1691_v31 }
 0x372   : > { %1282 = vst [vmem:[%s2950_s27 + $0x188] sm:$0xff] %v1218_v36  ;;  %1281 = vst [vmem:[%s2950_s27 + $0x180] sm:$0xff] %v1217_v60 }
 0x373   : > { %v1970_v12 = vpop.eup %1969 }
 0x374   : > { %v1127_v50 = vpop.xlane.xlu0 %1126  ;;  %v1220_v20 = vmul.f32 %v1970_v12, %v2901_v48  ;;  %v1219_v43 = vmul.f32 %v1970_v12, %v3271_v47 }
 0x375   : > { %1975 = vrcp.f32 %v1127_v50 }
 0x376   : > { %1284 = vst [vmem:[%s2950_s27 + $0x198] sm:$0xff] %v1220_v20  ;;  %v1693_v44 = vpack.c.bf16 %v1220_v20, %v1218_v36  ;;  %1283 = vst [vmem:[%s2950_s27 + $0x190] sm:$0xff] %v1219_v43  ;;  %v1695_v53 = vpack.c.bf16 %v1219_v43, %v1217_v60 }
 0x377   : > { %v1972_v22 = vpop.eup %1971 }
 0x378   : > { %v1130_v23 = vpop.xlane.xlu1 %1129  ;;  %1694 = vmatprep.subr.bf16.mxu1 %v1693_v44  ;;  %v1222_v63 = vmul.f32 %v1972_v22, %v2909_v34  ;;  %v1221_v19 = vmul.f32 %v1972_v22, %v2907_v25 }
 0x379   : > { %1977 = vrcp.f32 %v1130_v23  ;;  %1696 = vmatpush1.bf16.xpose.msra.mxu1 %v1695_v53 }
 0x37a   : > { %1286 = vst [vmem:[%s2950_s27 + $0x1a8] sm:$0xff] %v1222_v63  ;;  %1285 = vst [vmem:[%s2950_s27 + $0x1a0] sm:$0xff] %v1221_v19 }
 0x37b   : > { %v1974_v48 = vpop.eup %1973 }
 0x37c   : > { %v1133_v56 = vpop.xlane.xlu0 %1132  ;;  %v1224_v26 = vmul.f32 %v1974_v48, %v2917_v55  ;;  %v1223_v18 = vmul.f32 %v1974_v48, %v2915_v13 }
 0x37d   : > { %1979 = vrcp.f32 %v1133_v56 }
 0x37e   : > { %1288 = vst [vmem:[%s2950_s27 + $0x1b8] sm:$0xff] %v1224_v26  ;;  %v1697_v15 = vpack.c.bf16 %v1224_v26, %v1222_v63  ;;  %1287 = vst [vmem:[%s2950_s27 + $0x1b0] sm:$0xff] %v1223_v18  ;;  %v1699_v34 = vpack.c.bf16 %v1223_v18, %v1221_v19 }
 0x37f   : > { %v1976_v25 = vpop.eup %1975 }
 0x380   : > { %v1136_v2 = vpop.xlane.xlu1 %1135  ;;  %1698 = vmatprep.subr.bf16.mxu1 %v1697_v15  ;;  %v1226_v59 = vmul.f32 %v1976_v25, %v2925_v46  ;;  %v1225_v39 = vmul.f32 %v1976_v25, %v2923_v28  ;;  %v3273_v28 = vld [vmem:[#allocation27_spill] sm:$0xff] }
 0x381   : > { %1981 = vrcp.f32 %v1136_v2  ;;  %1700 = vmatpush1.bf16.xpose.msra.mxu1 %v1699_v34 }
 0x382   : > { %1290 = vst [vmem:[%s2950_s27 + $0x1c8] sm:$0xff] %v1226_v59  ;;  %1289 = vst [vmem:[%s2950_s27 + $0x1c0] sm:$0xff] %v1225_v39 }
 0x383   : > { %v1978_v13 = vpop.eup %1977 }
 0x384   : > { %v1228_v55 = vmul.f32 %v1978_v13, %v2931_v27  ;;  %v1227_v21 = vmul.f32 %v1978_v13, %v3272_v29 }
 0x386   : > { %1292 = vst [vmem:[%s2950_s27 + $0x1d8] sm:$0xff] %v1228_v55  ;;  %v1701_v51 = vpack.c.bf16 %v1228_v55, %v1226_v59  ;;  %1291 = vst [vmem:[%s2950_s27 + $0x1d0] sm:$0xff] %v1227_v21  ;;  %v1703_v62 = vpack.c.bf16 %v1227_v21, %v1225_v39 }
 0x387   : > { %v1980_v46 = vpop.eup %1979 }
 0x388   : > { %1702 = vmatprep.subr.bf16.mxu1 %v1701_v51  ;;  %v1230_v32 = vmul.f32 %v1980_v46, %v3273_v28  ;;  %v1229_v16 = vmul.f32 %v1980_v46, %v3274_v61 }
 0x389   : > { %1704 = vmatpush1.bf16.xpose.msra.mxu1 %v1703_v62 }
 0x38a   : > { %1294 = vst [vmem:[%s2950_s27 + $0x1e8] sm:$0xff] %v1230_v32  ;;  %1293 = vst [vmem:[%s2950_s27 + $0x1e0] sm:$0xff] %v1229_v16 }
 0x38b   : > { %v1982_v27 = vpop.eup %1981 }
 0x38c   : > { %v1232_v1 = vmul.f32 %v1982_v27, %v3275_v5  ;;  %v1231_v35 = vmul.f32 %v1982_v27, %v3276_v52 }
 0x38e   : > { %1296 = vst [vmem:[%s2950_s27 + $0x1f8] sm:$0xff] %v1232_v1  ;;  %v1705_v6 = vpack.c.bf16 %v1232_v1, %v1230_v32  ;;  %1295 = vst [vmem:[%s2950_s27 + $0x1f0] sm:$0xff] %v1231_v35  ;;  %v1707_v45 = vpack.c.bf16 %v1231_v35, %v1229_v16 }
 0x390   : > { %1706 = vmatprep.subr.bf16.mxu1 %v1705_v6 }
 0x391   : > { %1708 = vmatpush1.bf16.xpose.msra.mxu1 %v1707_v45 }
 0x398   : > { %1365 = vmatmul.mubr.f32.vlgmr.msra.gmra.mrb[0].mxu1 %v3277_v4 }
 0x399   : > { %2086 = shalt.err (!%p2083_p13)
}
 0x39a   : > { %s2087_s10 = scalar_lea.hbm %s3089_s26, 8192  ;;  %s2091_s8 = scalar_lea.hbm %s3175_s4, 16384 }
 0x39b   : > { %p2088_p11 = scmp.ne.s32.totalorder %s3089_s26, %s2087_s10  ;;  %p2092_p7 = scmp.lt.u32.totalorder %s3089_s26, %s3175_s4 }
 0x39c   : > { %p2093_p3 = scmp.lt.u32.totalorder %s2091_s8, %s2087_s10  ;;  %p2095_p4 = scmp.lt.u32.totalorder %s2087_s10, %s3089_s26 }
 0x39d   : > { %p2089_p2 = pnand %p2088_p11, %p3278_p10 }
 0x39e   : > { %p2094_p0 = por %p2093_p3, %p2092_p7 }
 0x39f   : > { %p2090_p5 = pneg %p2089_p2 }
 0x3a0   : > { %p2096_p12 = por %p2095_p4, %p2094_p0 }
 0x3a2   : > { %p2097_p1 = pnand %p2096_p12, %p2090_p5 }
 0x3a4   : > { %2100 = shalt.err (!%p2097_p1)
}
 0x3a5   : > { %s2198_s21 = smov 256   ;;  %s2199_s27 = smov 16  }
 0x3a6   : > { %1716 = dma.vmem_to_hbm [thread:$0]  (%p3278_p10), %s3091_s14, 8192, %s3089_s26, %s1382_s1, %s2198_s21, %s2198_s21, %s2199_s27  }
 0x3a7   : > { %s1643_s5 = sshll.u32 %s2183_s18, 7  ;;  %s310_s29 = scalar_lea.vmem [#allocation8], %s2421_s12 }
 0x3a8   : > { %s1398_s11 = sshll.u32 %s310_s29, 4  ;;  %s3122_s23 = scalar_lea.hbm %s3174_s3, %s1643_s5  ;;  %s3124_s11 = int_to_ptr.vmem [resolvable:$true] %s1398_s11 }
 0x3a9   : > { %s1377_s6 = scalar_lea.sflag [#allocation4], %s2418_s25  ;;  %s2101_s9 = scalar_lea.vmem %s3124_s11, 128 }
 0x3aa   : > { %p2102_p8 = scmp.ne.s32.totalorder %s3124_s11, %s2101_s9  ;;  %s2200_s18 = smov [#allocation8]  }
 0x3ab   : > { %s2105_s12 = sshll.u32 %s2200_s18, 4  ;;  %s2106_s12 = int_to_ptr.vmem [resolvable:$false] %s2105_s12 }
 0x3ac   : > { %p2103_p9 = pnand %p2102_p8, %p3278_p10  ;;  %s2107_s14 = scalar_lea.vmem %s2106_s12, 256 }
 0x3ad   : > { %p2108_p13 = scmp.lt.s32.totalorder %s3124_s11, %s2106_s12  ;;  %p2109_p11 = scmp.lt.s32.totalorder %s2107_s14, %s2101_s9 }
 0x3ae   : > { %p2104_p6 = pneg %p2103_p9 }
 0x3af   : > { %p2110_p2 = por %p2109_p11, %p2108_p13 }
 0x3b1   : > { %p2111_p5 = pnand %p2110_p2, %p2104_p6 }
 0x46b   : > { %v1366_v40 = vpop.f32.mrb[0].mxu1 }
 0x46c   : > { %v1368_v8 = vpop.f32.mrb[1].mxu1 }
 0x46d   : > { %v1373_v54 = vcombine.low %v1366_v40, %v1368_v8 }
 0x46f   : > { %1375 = vst [vmem:[%s310_s29] sm:$0xff] %v1373_v54 }
 0x470   : > { %2114 = shalt.err (!%p2111_p5)
}
 0x471   : > { %s2115_s25 = scalar_lea.hbm %s3122_s23, 128  ;;  %s2119_s10 = scalar_lea.hbm %s3174_s3, 256 }
 0x472   : > { %p2116_p7 = scmp.ne.s32.totalorder %s3122_s23, %s2115_s25  ;;  %p2120_p4 = scmp.lt.u32.totalorder %s3122_s23, %s3174_s3 }
 0x473   : > { %p2121_p12 = scmp.lt.u32.totalorder %s2119_s10, %s2115_s25  ;;  %p2123_p8 = scmp.lt.u32.totalorder %s2115_s25, %s3122_s23 }
 0x474   : > { %p2117_p3 = pnand %p2116_p7, %p3278_p10 }
 0x475   : > { %p2122_p1 = por %p2121_p12, %p2120_p4 }
 0x476   : > { %p2118_p0 = pneg %p2117_p3 }
 0x477   : > { %p2124_p9 = por %p2123_p8, %p2122_p1 }
 0x479   : > { %p2125_p6 = pnand %p2124_p9, %p2118_p0 }
 0x47b   : > { %2128 = shalt.err (!%p2125_p6)
}
 0x47c   : > { %1715 = dma.vmem_to_hbm [thread:$0]  (%p3278_p10), %s3124_s11, 128, %s3122_s23, %s1377_s6  }
 0x47d PF: > { %s3279_s8 = sld [smem:[#allocation16_spill]]  ;;  %s1429_s22 = sand.u32 1, %s2171_s15  }
 0x47e   : > { %p3280_p13 = scmp.ne.s32.totalorder %s3217_s30, 0  ;;  %s1430_s24 = scalar_lea.sflag [#allocation4], %s1429_s22 }
 0x483   : > { %p3281_p11 = scmp.ge.s32.totalorder %s3279_s8, 2 }
 0x485   : > { %p1730_p2 = pnand %p3281_p11, %p3280_p13 }
 0x487   : > { %2162 = dma.done.wait (!%p1730_p2), %s1430_s24, 128  }
 0x488   : > { %2164 = vsyncadd (!%p1730_p2), %s1430_s24, 4294967168  ;;  %s1439_s21 = scalar_lea.sflag [#allocation10], %s1429_s22 }
 0x489   : > { %2166 = dma.done.wait (!%p1730_p2), %s1439_s21, 8192  }
 0x48a   : > { %2168 = vsyncadd (!%p1730_p2), %s1439_s21, 4294959104  ;;  %s27_s20 = sadd.s32 1, %s3279_s8   ;;  %s3282_s28 = sld [smem:[#allocation18_spill]] }
 0x48b   : > { %p24_p5 = scmp.ge.s32.totalorder %s27_s20, 4   ;;  %s3283_s18 = sld [smem:[#allocation15_spill]] }
 0x48c   : > { %s3284_s19 = sld [smem:[#allocation17_spill]]  ;;  %s3285_s15 = smov %s2175_s16 }
 0x48d   : > { %s3286_s16 = smov %s2179_s17  ;;  %26 = sbr.rel (!%p24_p5) target bundleno = 12 (0xc), region = 118 }
 0x490   : > { %s3287_s17 = smov %s3282_s28 }
 0x494   :  { %1444 = vsyncpa [#allocation3], 1 }
 0x495   :  { %1446 = vsyncpa [#allocation3 + $0x1], 1 }
 0x496   :  { %1447 = vsyncpa [#allocation6], 1 }
 0x497   :  { %1449 = vsyncpa [#allocation6 + $0x1], 1 }
 0x498   :  { %1450 = vsyncpa [#allocation4], 1 }
 0x499   :  { %1452 = vsyncpa [#allocation4 + $0x1], 1 }
 0x49a   :  { %1453 = vsyncpa [#allocation10], 1 }
 0x49b   :  { %1455 = vsyncpa [#allocation10 + $0x1], 1 }

</bundles_post_ra>
